<compile_context>
chip_gen: v5e
topology: v5e:2x2
jax: 0.10.0
libtpu: 0.0.40
codegen_flags: <defaults>
</compile_context>

<pallas_src>
import math

import jax
import jax.numpy as jnp
from jax.experimental import pallas as pl
from jax.experimental.pallas import tpu as pltpu


# ---------------------------------------------------------------------------
# helpers
# ---------------------------------------------------------------------------
def _round_up(n, m):
    return ((n + m - 1) // m) * m


def _pick_row_block(oh, target):
    """Largest multiple-of-8 divisor of OH that is <= target (keeps the flat
    (TOH*(OW+1), Cp) output block 8-sublane aligned); falls back to OH."""
    t = min(oh, max(8, target))
    for cand in range(t, 7, -1):
        if cand % 8 == 0 and oh % cand == 0:
            return cand
    return oh


def _resident_spec(block_shape, index_map):
    """BlockSpec for a grid-invariant operand: request a single VMEM buffer."""
    try:
        return pl.BlockSpec(block_shape, index_map, pipeline_mode=pl.Buffered(1))
    except Exception:  # pragma: no cover - fall back if pipeline_mode unsupported
        return pl.BlockSpec(block_shape, index_map)


# ---------------------------------------------------------------------------
# Pallas kernels
# ---------------------------------------------------------------------------
def _conv3x3s2_kernel(pm_ref, pe_ref, wa_ref, wb_ref, b_ref, o_ref, xs_ref):
    # pm_ref: (1, 2*TOH, OWp1, 2C)  padded-NHWC rows [2*i*TOH, 2*i*TOH + 2*TOH)
    # pe_ref: (1, 1,     OWp1, 2C)  the single overlap row 2*(i+1)*TOH
    # wa_ref: (3, 2C, Cp)  per-kh weights for kw=0,1 fused along K  (resident)
    # wb_ref: (3,  C, Cp)  per-kh weights for kw=2                  (resident)
    # b_ref : (1, Cp) f32 bias
    # o_ref : (1, TOH*OWp1, Cp)  flat (row, col) output slab (col==OW is garbage)
    # xs_ref: (2, (TOH+1)*OWp1 + 1, 2C) scratch: per row-parity flattened planes
    _, m, cp = o_ref.shape
    owp1 = pm_ref.shape[2]
    c2 = pm_ref.shape[-1]
    c = c2 // 2
    toh = m // owp1
    f32 = jnp.float32

    # --- gather the two row-parity planes into contiguous (flat-row, 2C) scratch ---
    for r in range(toh):                                   # unrolled at trace time
        xs_ref[0, pl.ds(r * owp1, owp1), :] = pm_ref[0, 2 * r]
        xs_ref[1, pl.ds(r * owp1, owp1), :] = pm_ref[0, 2 * r + 1]
    xs_ref[0, pl.ds(m, owp1), :] = pe_ref[0, 0]
    zrow = jnp.zeros((1, c2), dtype=xs_ref.dtype)
    # These rows only feed the discarded (col == OW) output rows; zero them so the
    # kernel never reads uninitialized scratch.
    xs_ref[0, pl.ds(m + owp1, 1), :] = zrow
    xs_ref[1, pl.ds(m, 1), :] = zrow

    # --- nine 3x3/stride-2 taps as six batched MXU matmuls, one f32 accumulator ---
    # kh -> (row parity plane, flat-row shift): 0 -> (0, 0), 1 -> (1, 0), 2 -> (0, OWp1)
    acc = jnp.dot(xs_ref[0, pl.ds(0, m), :], wa_ref[0], preferred_element_type=f32)
    acc = acc + jnp.dot(xs_ref[1, pl.ds(0, m), :], wa_ref[1],
                        preferred_element_type=f32)
    acc = acc + jnp.dot(xs_ref[0, pl.ds(owp1, m), :], wa_ref[2],
                        preferred_element_type=f32)
    acc = acc + jnp.dot(xs_ref[0, pl.ds(1, m), pl.ds(0, c)], wb_ref[0],
                        preferred_element_type=f32)
    acc = acc + jnp.dot(xs_ref[1, pl.ds(1, m), pl.ds(0, c)], wb_ref[1],
                        preferred_element_type=f32)
    acc = acc + jnp.dot(xs_ref[0, pl.ds(owp1 + 1, m), pl.ds(0, c)], wb_ref[2],
                        preferred_element_type=f32)
    o_ref[0] = (acc + b_ref[...]).astype(o_ref.dtype)


def _avgpool_matmul_kernel(x_ref, q_ref, o_ref):
    # x_ref: (TM, 2W)  rows are (b, c, oh); cols = [even-h row | odd-h row]
    # q_ref: (2W, OW)  constant 0.25 pooling matrix (resident, single buffer)
    # o_ref: (TM, OW)
    o_ref[...] = jnp.dot(x_ref[...], q_ref[...],
                         preferred_element_type=jnp.float32).astype(o_ref.dtype)


# ---------------------------------------------------------------------------
# wrappers
# ---------------------------------------------------------------------------
def downsample_conv(x_nchw, weight, bias, *, row_block=8):
    """Conv2d(C, C, k=3, stride=2, padding=1).  x: (B,C,H,W), weight: (C,C,3,3)."""
    B, C, H, W = x_nchw.shape
    if H % 2 or W % 2:
        raise NotImplementedError("even H/W required")  # TODO(synk): odd spatial sizes
    OH, OW = H // 2, W // 2
    OWp1 = OW + 1
    C2 = 2 * C
    Cp = _round_up(C, 128)                      # lane-dense output channel dim
    TOH = _pick_row_block(OH, row_block)        # output rows per grid step
    M = TOH * OWp1                              # batched matmul rows per grid step
    out_dtype = x_nchw.dtype

    # NCHW -> NHWC, zero-pad (padding=1), bf16; then a FREE reshape folds the
    # even/odd column parity into the channel dim.
    x = jnp.transpose(x_nchw, (0, 2, 3, 1))
    xp = jnp.pad(x, ((0, 0), (1, 1), (1, 1), (0, 0))).astype(jnp.bfloat16)
    planes = xp.reshape(B, H + 2, OWp1, C2)

    # Weights (Cout, Cin, 3, 3) -> per-kh fused (kw=0,1) block + kw=2 block, bf16,
    # Cout zero-padded to Cp.  Bias stays f32 (added after f32 accumulation).
    wt = jnp.transpose(weight, (2, 3, 1, 0))                      # (kh, kw, Cin, Cout)
    wa = jnp.pad(wt[:, 0:2].reshape(3, C2, C),
                 ((0, 0), (0, 0), (0, Cp - C))).astype(jnp.bfloat16)
    wb = jnp.pad(wt[:, 2], ((0, 0), (0, 0), (0, Cp - C))).astype(jnp.bfloat16)
    b2 = jnp.pad(bias, (0, Cp - C)).reshape(1, Cp).astype(jnp.float32)

    grid = (B, OH // TOH)
    pm_spec = pl.BlockSpec((1, 2 * TOH, OWp1, C2), lambda b, i: (b, i, 0, 0))
    pe_spec = pl.BlockSpec((1, 1, OWp1, C2),
                           lambda b, i: (b, (i + 1) * 2 * TOH, 0, 0))
    wa_spec = _resident_spec((3, C2, Cp), lambda b, i: (0, 0, 0))
    wb_spec = _resident_spec((3, C, Cp), lambda b, i: (0, 0, 0))
    b_spec = _resident_spec((1, Cp), lambda b, i: (0, 0))
    o_spec = pl.BlockSpec((1, M, Cp), lambda b, i: (b, i, 0))

    xs_rows = (TOH + 1) * OWp1 + 1
    scratch = [pltpu.VMEM((2, xs_rows, C2), jnp.bfloat16)]

    # Explicit VMEM budget: double-buffered input/output blocks + single-buffered
    # weights + gather scratch + f32 accumulator, with headroom.
    esz_o = jnp.dtype(out_dtype).itemsize
    vmem = (2 * (2 * TOH + 1) * OWp1 * C2 * 2          # pm + pe double buffers (bf16)
            + 2 * xs_rows * C2 * 2                     # scratch
            + 9 * C * Cp * 2 + Cp * 4                  # resident weights + bias
            + 2 * M * Cp * esz_o + M * Cp * 4)         # out double buffer + f32 acc
    vmem = min(int(vmem * 1.25) + (4 << 20), 120 << 20)

    cost = pl.CostEstimate(
        flops=2 * B * OH * OWp1 * 9 * C * Cp,
        transcendentals=0,
        bytes_accessed=(planes.size * 2 + (wa.size + wb.size) * 2
                        + B * OH * OWp1 * Cp * esz_o),
    )

    out = pl.pallas_call(
        _conv3x3s2_kernel,
        out_shape=jax.ShapeDtypeStruct((B, OH * OWp1, Cp), out_dtype),
        grid=grid,
        in_specs=[pm_spec, pe_spec, wa_spec, wb_spec, b_spec],
        out_specs=o_spec,
        scratch_shapes=scratch,
        compiler_params=pltpu.CompilerParams(
            dimension_semantics=("parallel", "parallel"),
            vmem_limit_bytes=vmem),
        cost_estimate=cost,
    )(planes, planes, wa, wb, b2)

    # Free reshape, drop the padded column + padded Cout, back to NCHW.
    out = out.reshape(B, OH, OWp1, Cp)[:, :, :OW, :C]
    return jnp.transpose(out, (0, 3, 1, 2))


def downsample_avgpool(x_nchw, *, row_block=1024):
    """AvgPool2d(kernel_size=2, stride=2) directly in NCHW (no transposes)."""
    B, C, H, W = x_nchw.shape
    if H % 2 or W % 2:
        raise NotImplementedError("even H/W required")  # TODO(synk): odd spatial sizes
    OH, OW = H // 2, W // 2
    M = B * C * OH

    # Free row-major reshape: row (b, c, oh) = [x[b,c,2oh,:], x[b,c,2oh+1,:]]
    x2 = x_nchw.reshape(M, 2 * W)
    # Constant pooling matrix: q[hp*W + w, ow] = 0.25 iff w // 2 == ow
    w_idx = jnp.arange(2 * W) % W
    q = jnp.where(w_idx[:, None] // 2 == jnp.arange(OW)[None, :], 0.25, 0.0)
    q = q.astype(x_nchw.dtype)

    TM = min(_round_up(M, 8), row_block)
    # Ragged last block (M % TM != 0): rows are independent, padded input rows only
    # feed padded output rows that Pallas clips on writeback.
    grid = (pl.cdiv(M, TM),)
    esize = jnp.dtype(x_nchw.dtype).itemsize
    vmem = 2 * TM * 2 * W * esize + 2 * W * OW * esize + 2 * TM * OW * esize
    vmem = min(int(vmem * 1.5) + (4 << 20), 120 << 20)
    cost = pl.CostEstimate(
        flops=2 * M * 2 * W * OW,
        transcendentals=0,
        bytes_accessed=(M * 2 * W + 2 * W * OW + M * OW) * esize,
    )

    out2 = pl.pallas_call(
        _avgpool_matmul_kernel,
        out_shape=jax.ShapeDtypeStruct((M, OW), x_nchw.dtype),
        grid=grid,
        in_specs=[pl.BlockSpec((TM, 2 * W), lambda i: (i, 0)),
                  _resident_spec((2 * W, OW), lambda i: (0, 0))],
        out_specs=pl.BlockSpec((TM, OW), lambda i: (i, 0)),
        compiler_params=pltpu.CompilerParams(
            dimension_semantics=("parallel",), vmem_limit_bytes=vmem),
        cost_estimate=cost,
    )(x2, q)

    return out2.reshape(B, C, OH, OW)               # free reshape back to NCHW


def downsample(x_nchw, weight=None, bias=None, use_conv=True):
    if use_conv:
        return downsample_conv(x_nchw, weight, bias)
    return downsample_avgpool(x_nchw)


# ---------------------------------------------------------------------------
# Demo / correctness check
# ---------------------------------------------------------------------------
if __name__ == "__main__":
    B, C, H, W = 2, 4, 16, 16

    key = jax.random.PRNGKey(0)
    kx, kw_, kb = jax.random.split(key, 3)

    fan_in = C * 3 * 3
    bound = 1.0 / math.sqrt(fan_in)
    x = jax.random.normal(kx, (B, C, H, W), dtype=jnp.float32)
    weight = jax.random.uniform(kw_, (C, C, 3, 3), jnp.float32, -bound, bound)
    bias = jax.random.uniform(kb, (C,), jnp.float32, -bound, bound)

    # Pallas conv path (bf16 inputs/weights, f32 accumulation)
    y_conv = jax.block_until_ready(downsample(x, weight, bias, use_conv=True))
    assert y_conv.shape == (B, C, H // 2, W // 2)

    # Reference with the same bf16-rounded operands so the check stays tight; the
    # kernel differs from a pure-f32 conv only by the bf16 input/weight rounding.
    x_bf = x.astype(jnp.bfloat16).astype(jnp.float32)
    w_bf = weight.astype(jnp.bfloat16).astype(jnp.float32)
    y_ref = jax.lax.conv_general_dilated(
        x_bf, w_bf, window_strides=(2, 2), padding=((1, 1), (1, 1)),
        dimension_numbers=("NCHW", "OIHW", "NCHW"),
        precision=jax.lax.Precision.HIGHEST,
    ) + bias.reshape(1, C, 1, 1)
    assert jnp.allclose(y_conv, y_ref, atol=5e-3, rtol=5e-3), "conv mismatch"

    # Pallas avg-pool path (k=2, s=2 interpretation of the invalid PyTorch call)
    y_pool = jax.block_until_ready(downsample(x, use_conv=False))
    y_pool_ref = jnp.mean(x.reshape(B, C, H // 2, 2, W // 2, 2), axis=(3, 5))
    assert jnp.allclose(y_pool, y_pool_ref, atol=1e-5, rtol=1e-5), "avgpool mismatch"

    print("KERNEL_OK")
</pallas_src>

<mosaic_0001>
module attributes {stable_mosaic.version = 11 : i64} {
  func.func @_conv3x3s2_kernel(%arg0: i32, %arg1: i32, %arg2: memref<1x16x9x8xbf16, #tpu.memory_space<vmem>>, %arg3: memref<1x1x9x8xbf16, #tpu.memory_space<vmem>>, %arg4: memref<3x8x128xbf16, #tpu.memory_space<vmem>>, %arg5: memref<3x4x128xbf16, #tpu.memory_space<vmem>>, %arg6: memref<1x128xf32, #tpu.memory_space<vmem>>, %arg7: memref<1x72x128xf32, #tpu.memory_space<vmem>>, %arg8: memref<2x82x8xbf16, #tpu.memory_space<vmem>>) attributes {dimension_semantics = [#tpu.dimension_semantics<parallel>, #tpu.dimension_semantics<parallel>], iteration_bounds = array<i64: 2, 1>, scalar_prefetch = 0 : i64, scratch_operands = 1 : i64, tpu.core_type = #tpu.core_type<tc>, window_params = [{transform_indices = @transform_0, window_bounds = array<i64: 1, 16, 9, 8>}, {transform_indices = @transform_1, window_bounds = array<i64: 1, 1, 9, 8>}, {pipeline_mode = #tpu.pipeline_mode<synchronous>, transform_indices = @transform_2, window_bounds = array<i64: 3, 8, 128>}, {pipeline_mode = #tpu.pipeline_mode<synchronous>, transform_indices = @transform_3, window_bounds = array<i64: 3, 4, 128>}, {pipeline_mode = #tpu.pipeline_mode<synchronous>, transform_indices = @transform_4, window_bounds = array<i64: 1, 128>}, {transform_indices = @transform_5, window_bounds = array<i64: 1, 72, 128>}]} {
    %c0 = arith.constant 0 : index
    %c0_0 = arith.constant 0 : index
    %c0_1 = arith.constant 0 : index
    %c0_2 = arith.constant 0 : index
    %0 = vector.load %arg2[%c0, %c0_0, %c0_1, %c0_2] : memref<1x16x9x8xbf16, #tpu.memory_space<vmem>>, vector<1x1x9x8xbf16>
    %1 = vector.shape_cast %0 : vector<1x1x9x8xbf16> to vector<9x8xbf16>
    %c0_3 = arith.constant 0 : index
    %c0_4 = arith.constant 0 : index
    %c0_5 = arith.constant 0 : index
    %2 = vector.load %arg8[%c0_3, %c0_4, %c0_5] : memref<2x82x8xbf16, #tpu.memory_space<vmem>>, vector<1x9x8xbf16>
    %3 = vector.shape_cast %2 : vector<1x9x8xbf16> to vector<9x8xbf16>
    %4 = vector.shape_cast %1 : vector<9x8xbf16> to vector<1x9x8xbf16>
    tpu.vector_store %arg8[%c0_3, %c0_4, %c0_5], %4 {strides = array<i32>} : memref<2x82x8xbf16, #tpu.memory_space<vmem>>, vector<1x9x8xbf16>,
    %c0_6 = arith.constant 0 : index
    %c1 = arith.constant 1 : index
    %c0_7 = arith.constant 0 : index
    %c0_8 = arith.constant 0 : index
    %5 = vector.load %arg2[%c0_6, %c1, %c0_7, %c0_8] : memref<1x16x9x8xbf16, #tpu.memory_space<vmem>>, vector<1x1x9x8xbf16>
    %6 = vector.shape_cast %5 : vector<1x1x9x8xbf16> to vector<9x8xbf16>
    %c1_9 = arith.constant 1 : index
    %c0_10 = arith.constant 0 : index
    %c0_11 = arith.constant 0 : index
    %7 = vector.load %arg8[%c1_9, %c0_10, %c0_11] : memref<2x82x8xbf16, #tpu.memory_space<vmem>>, vector<1x9x8xbf16>
    %8 = vector.shape_cast %7 : vector<1x9x8xbf16> to vector<9x8xbf16>
    %9 = vector.shape_cast %6 : vector<9x8xbf16> to vector<1x9x8xbf16>
    tpu.vector_store %arg8[%c1_9, %c0_10, %c0_11], %9 {strides = array<i32>} : memref<2x82x8xbf16, #tpu.memory_space<vmem>>, vector<1x9x8xbf16>,
    %c0_12 = arith.constant 0 : index
    %c2 = arith.constant 2 : index
    %c0_13 = arith.constant 0 : index
    %c0_14 = arith.constant 0 : index
    %10 = vector.load %arg2[%c0_12, %c2, %c0_13, %c0_14] : memref<1x16x9x8xbf16, #tpu.memory_space<vmem>>, vector<1x1x9x8xbf16>
    %11 = vector.shape_cast %10 : vector<1x1x9x8xbf16> to vector<9x8xbf16>
    %c0_15 = arith.constant 0 : index
    %c9 = arith.constant 9 : index
    %c0_16 = arith.constant 0 : index
    %12 = vector.load %arg8[%c0_15, %c9, %c0_16] : memref<2x82x8xbf16, #tpu.memory_space<vmem>>, vector<1x9x8xbf16>
    %13 = vector.shape_cast %12 : vector<1x9x8xbf16> to vector<9x8xbf16>
    %14 = vector.shape_cast %11 : vector<9x8xbf16> to vector<1x9x8xbf16>
    tpu.vector_store %arg8[%c0_15, %c9, %c0_16], %14 {strides = array<i32>} : memref<2x82x8xbf16, #tpu.memory_space<vmem>>, vector<1x9x8xbf16>,
    %c0_17 = arith.constant 0 : index
    %c3 = arith.constant 3 : index
    %c0_18 = arith.constant 0 : index
    %c0_19 = arith.constant 0 : index
    %15 = vector.load %arg2[%c0_17, %c3, %c0_18, %c0_19] : memref<1x16x9x8xbf16, #tpu.memory_space<vmem>>, vector<1x1x9x8xbf16>
    %16 = vector.shape_cast %15 : vector<1x1x9x8xbf16> to vector<9x8xbf16>
    %c1_20 = arith.constant 1 : index
    %c9_21 = arith.constant 9 : index
    %c0_22 = arith.constant 0 : index
    %17 = vector.load %arg8[%c1_20, %c9_21, %c0_22] : memref<2x82x8xbf16, #tpu.memory_space<vmem>>, vector<1x9x8xbf16>
    %18 = vector.shape_cast %17 : vector<1x9x8xbf16> to vector<9x8xbf16>
    %19 = vector.shape_cast %16 : vector<9x8xbf16> to vector<1x9x8xbf16>
    tpu.vector_store %arg8[%c1_20, %c9_21, %c0_22], %19 {strides = array<i32>} : memref<2x82x8xbf16, #tpu.memory_space<vmem>>, vector<1x9x8xbf16>,
    %c0_23 = arith.constant 0 : index
    %c4 = arith.constant 4 : index
    %c0_24 = arith.constant 0 : index
    %c0_25 = arith.constant 0 : index
    %20 = vector.load %arg2[%c0_23, %c4, %c0_24, %c0_25] : memref<1x16x9x8xbf16, #tpu.memory_space<vmem>>, vector<1x1x9x8xbf16>
    %21 = vector.shape_cast %20 : vector<1x1x9x8xbf16> to vector<9x8xbf16>
    %c0_26 = arith.constant 0 : index
    %c18 = arith.constant 18 : index
    %c0_27 = arith.constant 0 : index
    %22 = vector.load %arg8[%c0_26, %c18, %c0_27] : memref<2x82x8xbf16, #tpu.memory_space<vmem>>, vector<1x9x8xbf16>
    %23 = vector.shape_cast %22 : vector<1x9x8xbf16> to vector<9x8xbf16>
    %24 = vector.shape_cast %21 : vector<9x8xbf16> to vector<1x9x8xbf16>
    tpu.vector_store %arg8[%c0_26, %c18, %c0_27], %24 {strides = array<i32>} : memref<2x82x8xbf16, #tpu.memory_space<vmem>>, vector<1x9x8xbf16>,
    %c0_28 = arith.constant 0 : index
    %c5 = arith.constant 5 : index
    %c0_29 = arith.constant 0 : index
    %c0_30 = arith.constant 0 : index
    %25 = vector.load %arg2[%c0_28, %c5, %c0_29, %c0_30] : memref<1x16x9x8xbf16, #tpu.memory_space<vmem>>, vector<1x1x9x8xbf16>
    %26 = vector.shape_cast %25 : vector<1x1x9x8xbf16> to vector<9x8xbf16>
    %c1_31 = arith.constant 1 : index
    %c18_32 = arith.constant 18 : index
    %c0_33 = arith.constant 0 : index
    %27 = vector.load %arg8[%c1_31, %c18_32, %c0_33] : memref<2x82x8xbf16, #tpu.memory_space<vmem>>, vector<1x9x8xbf16>
    %28 = vector.shape_cast %27 : vector<1x9x8xbf16> to vector<9x8xbf16>
    %29 = vector.shape_cast %26 : vector<9x8xbf16> to vector<1x9x8xbf16>
    tpu.vector_store %arg8[%c1_31, %c18_32, %c0_33], %29 {strides = array<i32>} : memref<2x82x8xbf16, #tpu.memory_space<vmem>>, vector<1x9x8xbf16>,
    %c0_34 = arith.constant 0 : index
    %c6 = arith.constant 6 : index
    %c0_35 = arith.constant 0 : index
    %c0_36 = arith.constant 0 : index
    %30 = vector.load %arg2[%c0_34, %c6, %c0_35, %c0_36] : memref<1x16x9x8xbf16, #tpu.memory_space<vmem>>, vector<1x1x9x8xbf16>
    %31 = vector.shape_cast %30 : vector<1x1x9x8xbf16> to vector<9x8xbf16>
    %c0_37 = arith.constant 0 : index
    %c27 = arith.constant 27 : index
    %c0_38 = arith.constant 0 : index
    %32 = vector.load %arg8[%c0_37, %c27, %c0_38] : memref<2x82x8xbf16, #tpu.memory_space<vmem>>, vector<1x9x8xbf16>
    %33 = vector.shape_cast %32 : vector<1x9x8xbf16> to vector<9x8xbf16>
    %34 = vector.shape_cast %31 : vector<9x8xbf16> to vector<1x9x8xbf16>
    tpu.vector_store %arg8[%c0_37, %c27, %c0_38], %34 {strides = array<i32>} : memref<2x82x8xbf16, #tpu.memory_space<vmem>>, vector<1x9x8xbf16>,
    %c0_39 = arith.constant 0 : index
    %c7 = arith.constant 7 : index
    %c0_40 = arith.constant 0 : index
    %c0_41 = arith.constant 0 : index
    %35 = vector.load %arg2[%c0_39, %c7, %c0_40, %c0_41] : memref<1x16x9x8xbf16, #tpu.memory_space<vmem>>, vector<1x1x9x8xbf16>
    %36 = vector.shape_cast %35 : vector<1x1x9x8xbf16> to vector<9x8xbf16>
    %c1_42 = arith.constant 1 : index
    %c27_43 = arith.constant 27 : index
    %c0_44 = arith.constant 0 : index
    %37 = vector.load %arg8[%c1_42, %c27_43, %c0_44] : memref<2x82x8xbf16, #tpu.memory_space<vmem>>, vector<1x9x8xbf16>
    %38 = vector.shape_cast %37 : vector<1x9x8xbf16> to vector<9x8xbf16>
    %39 = vector.shape_cast %36 : vector<9x8xbf16> to vector<1x9x8xbf16>
    tpu.vector_store %arg8[%c1_42, %c27_43, %c0_44], %39 {strides = array<i32>} : memref<2x82x8xbf16, #tpu.memory_space<vmem>>, vector<1x9x8xbf16>,
    %c0_45 = arith.constant 0 : index
    %c8 = arith.constant 8 : index
    %c0_46 = arith.constant 0 : index
    %c0_47 = arith.constant 0 : index
    %40 = vector.load %arg2[%c0_45, %c8, %c0_46, %c0_47] : memref<1x16x9x8xbf16, #tpu.memory_space<vmem>>, vector<1x1x9x8xbf16>
    %41 = vector.shape_cast %40 : vector<1x1x9x8xbf16> to vector<9x8xbf16>
    %c0_48 = arith.constant 0 : index
    %c36 = arith.constant 36 : index
    %c0_49 = arith.constant 0 : index
    %42 = vector.load %arg8[%c0_48, %c36, %c0_49] : memref<2x82x8xbf16, #tpu.memory_space<vmem>>, vector<1x9x8xbf16>
    %43 = vector.shape_cast %42 : vector<1x9x8xbf16> to vector<9x8xbf16>
    %44 = vector.shape_cast %41 : vector<9x8xbf16> to vector<1x9x8xbf16>
    tpu.vector_store %arg8[%c0_48, %c36, %c0_49], %44 {strides = array<i32>} : memref<2x82x8xbf16, #tpu.memory_space<vmem>>, vector<1x9x8xbf16>,
    %c0_50 = arith.constant 0 : index
    %c9_51 = arith.constant 9 : index
    %c0_52 = arith.constant 0 : index
    %c0_53 = arith.constant 0 : index
    %45 = vector.load %arg2[%c0_50, %c9_51, %c0_52, %c0_53] : memref<1x16x9x8xbf16, #tpu.memory_space<vmem>>, vector<1x1x9x8xbf16>
    %46 = vector.shape_cast %45 : vector<1x1x9x8xbf16> to vector<9x8xbf16>
    %c1_54 = arith.constant 1 : index
    %c36_55 = arith.constant 36 : index
    %c0_56 = arith.constant 0 : index
    %47 = vector.load %arg8[%c1_54, %c36_55, %c0_56] : memref<2x82x8xbf16, #tpu.memory_space<vmem>>, vector<1x9x8xbf16>
    %48 = vector.shape_cast %47 : vector<1x9x8xbf16> to vector<9x8xbf16>
    %49 = vector.shape_cast %46 : vector<9x8xbf16> to vector<1x9x8xbf16>
    tpu.vector_store %arg8[%c1_54, %c36_55, %c0_56], %49 {strides = array<i32>} : memref<2x82x8xbf16, #tpu.memory_space<vmem>>, vector<1x9x8xbf16>,
    %c0_57 = arith.constant 0 : index
    %c10 = arith.constant 10 : index
    %c0_58 = arith.constant 0 : index
    %c0_59 = arith.constant 0 : index
    %50 = vector.load %arg2[%c0_57, %c10, %c0_58, %c0_59] : memref<1x16x9x8xbf16, #tpu.memory_space<vmem>>, vector<1x1x9x8xbf16>
    %51 = vector.shape_cast %50 : vector<1x1x9x8xbf16> to vector<9x8xbf16>
    %c0_60 = arith.constant 0 : index
    %c45 = arith.constant 45 : index
    %c0_61 = arith.constant 0 : index
    %52 = vector.load %arg8[%c0_60, %c45, %c0_61] : memref<2x82x8xbf16, #tpu.memory_space<vmem>>, vector<1x9x8xbf16>
    %53 = vector.shape_cast %52 : vector<1x9x8xbf16> to vector<9x8xbf16>
    %54 = vector.shape_cast %51 : vector<9x8xbf16> to vector<1x9x8xbf16>
    tpu.vector_store %arg8[%c0_60, %c45, %c0_61], %54 {strides = array<i32>} : memref<2x82x8xbf16, #tpu.memory_space<vmem>>, vector<1x9x8xbf16>,
    %c0_62 = arith.constant 0 : index
    %c11 = arith.constant 11 : index
    %c0_63 = arith.constant 0 : index
    %c0_64 = arith.constant 0 : index
    %55 = vector.load %arg2[%c0_62, %c11, %c0_63, %c0_64] : memref<1x16x9x8xbf16, #tpu.memory_space<vmem>>, vector<1x1x9x8xbf16>
    %56 = vector.shape_cast %55 : vector<1x1x9x8xbf16> to vector<9x8xbf16>
    %c1_65 = arith.constant 1 : index
    %c45_66 = arith.constant 45 : index
    %c0_67 = arith.constant 0 : index
    %57 = vector.load %arg8[%c1_65, %c45_66, %c0_67] : memref<2x82x8xbf16, #tpu.memory_space<vmem>>, vector<1x9x8xbf16>
    %58 = vector.shape_cast %57 : vector<1x9x8xbf16> to vector<9x8xbf16>
    %59 = vector.shape_cast %56 : vector<9x8xbf16> to vector<1x9x8xbf16>
    tpu.vector_store %arg8[%c1_65, %c45_66, %c0_67], %59 {strides = array<i32>} : memref<2x82x8xbf16, #tpu.memory_space<vmem>>, vector<1x9x8xbf16>,
    %c0_68 = arith.constant 0 : index
    %c12 = arith.constant 12 : index
    %c0_69 = arith.constant 0 : index
    %c0_70 = arith.constant 0 : index
    %60 = vector.load %arg2[%c0_68, %c12, %c0_69, %c0_70] : memref<1x16x9x8xbf16, #tpu.memory_space<vmem>>, vector<1x1x9x8xbf16>
    %61 = vector.shape_cast %60 : vector<1x1x9x8xbf16> to vector<9x8xbf16>
    %c0_71 = arith.constant 0 : index
    %c54 = arith.constant 54 : index
    %c0_72 = arith.constant 0 : index
    %62 = vector.load %arg8[%c0_71, %c54, %c0_72] : memref<2x82x8xbf16, #tpu.memory_space<vmem>>, vector<1x9x8xbf16>
    %63 = vector.shape_cast %62 : vector<1x9x8xbf16> to vector<9x8xbf16>
    %64 = vector.shape_cast %61 : vector<9x8xbf16> to vector<1x9x8xbf16>
    tpu.vector_store %arg8[%c0_71, %c54, %c0_72], %64 {strides = array<i32>} : memref<2x82x8xbf16, #tpu.memory_space<vmem>>, vector<1x9x8xbf16>,
    %c0_73 = arith.constant 0 : index
    %c13 = arith.constant 13 : index
    %c0_74 = arith.constant 0 : index
    %c0_75 = arith.constant 0 : index
    %65 = vector.load %arg2[%c0_73, %c13, %c0_74, %c0_75] : memref<1x16x9x8xbf16, #tpu.memory_space<vmem>>, vector<1x1x9x8xbf16>
    %66 = vector.shape_cast %65 : vector<1x1x9x8xbf16> to vector<9x8xbf16>
    %c1_76 = arith.constant 1 : index
    %c54_77 = arith.constant 54 : index
    %c0_78 = arith.constant 0 : index
    %67 = vector.load %arg8[%c1_76, %c54_77, %c0_78] : memref<2x82x8xbf16, #tpu.memory_space<vmem>>, vector<1x9x8xbf16>
    %68 = vector.shape_cast %67 : vector<1x9x8xbf16> to vector<9x8xbf16>
    %69 = vector.shape_cast %66 : vector<9x8xbf16> to vector<1x9x8xbf16>
    tpu.vector_store %arg8[%c1_76, %c54_77, %c0_78], %69 {strides = array<i32>} : memref<2x82x8xbf16, #tpu.memory_space<vmem>>, vector<1x9x8xbf16>,
    %c0_79 = arith.constant 0 : index
    %c14 = arith.constant 14 : index
    %c0_80 = arith.constant 0 : index
    %c0_81 = arith.constant 0 : index
    %70 = vector.load %arg2[%c0_79, %c14, %c0_80, %c0_81] : memref<1x16x9x8xbf16, #tpu.memory_space<vmem>>, vector<1x1x9x8xbf16>
    %71 = vector.shape_cast %70 : vector<1x1x9x8xbf16> to vector<9x8xbf16>
    %c0_82 = arith.constant 0 : index
    %c63 = arith.constant 63 : index
    %c0_83 = arith.constant 0 : index
    %72 = vector.load %arg8[%c0_82, %c63, %c0_83] : memref<2x82x8xbf16, #tpu.memory_space<vmem>>, vector<1x9x8xbf16>
    %73 = vector.shape_cast %72 : vector<1x9x8xbf16> to vector<9x8xbf16>
    %74 = vector.shape_cast %71 : vector<9x8xbf16> to vector<1x9x8xbf16>
    tpu.vector_store %arg8[%c0_82, %c63, %c0_83], %74 {strides = array<i32>} : memref<2x82x8xbf16, #tpu.memory_space<vmem>>, vector<1x9x8xbf16>,
    %c0_84 = arith.constant 0 : index
    %c15 = arith.constant 15 : index
    %c0_85 = arith.constant 0 : index
    %c0_86 = arith.constant 0 : index
    %75 = vector.load %arg2[%c0_84, %c15, %c0_85, %c0_86] : memref<1x16x9x8xbf16, #tpu.memory_space<vmem>>, vector<1x1x9x8xbf16>
    %76 = vector.shape_cast %75 : vector<1x1x9x8xbf16> to vector<9x8xbf16>
    %c1_87 = arith.constant 1 : index
    %c63_88 = arith.constant 63 : index
    %c0_89 = arith.constant 0 : index
    %77 = vector.load %arg8[%c1_87, %c63_88, %c0_89] : memref<2x82x8xbf16, #tpu.memory_space<vmem>>, vector<1x9x8xbf16>
    %78 = vector.shape_cast %77 : vector<1x9x8xbf16> to vector<9x8xbf16>
    %79 = vector.shape_cast %76 : vector<9x8xbf16> to vector<1x9x8xbf16>
    tpu.vector_store %arg8[%c1_87, %c63_88, %c0_89], %79 {strides = array<i32>} : memref<2x82x8xbf16, #tpu.memory_space<vmem>>, vector<1x9x8xbf16>,
    %c0_90 = arith.constant 0 : index
    %c0_91 = arith.constant 0 : index
    %c0_92 = arith.constant 0 : index
    %c0_93 = arith.constant 0 : index
    %80 = vector.load %arg3[%c0_90, %c0_91, %c0_92, %c0_93] : memref<1x1x9x8xbf16, #tpu.memory_space<vmem>>, vector<1x1x9x8xbf16>
    %81 = vector.shape_cast %80 : vector<1x1x9x8xbf16> to vector<9x8xbf16>
    %c0_94 = arith.constant 0 : index
    %c72 = arith.constant 72 : index
    %c0_95 = arith.constant 0 : index
    %82 = vector.load %arg8[%c0_94, %c72, %c0_95] : memref<2x82x8xbf16, #tpu.memory_space<vmem>>, vector<1x9x8xbf16>
    %83 = vector.shape_cast %82 : vector<1x9x8xbf16> to vector<9x8xbf16>
    %84 = vector.shape_cast %81 : vector<9x8xbf16> to vector<1x9x8xbf16>
    tpu.vector_store %arg8[%c0_94, %c72, %c0_95], %84 {strides = array<i32>} : memref<2x82x8xbf16, #tpu.memory_space<vmem>>, vector<1x9x8xbf16>,
    %cst = arith.constant 0.000000e+00 : bf16
    %85 = vector.broadcast %cst : bf16 to vector<1x8xbf16>
    %c0_96 = arith.constant 0 : index
    %c81 = arith.constant 81 : index
    %c0_97 = arith.constant 0 : index
    %86 = vector.load %arg8[%c0_96, %c81, %c0_97] : memref<2x82x8xbf16, #tpu.memory_space<vmem>>, vector<1x1x8xbf16>
    %87 = vector.shape_cast %86 : vector<1x1x8xbf16> to vector<1x8xbf16>
    %88 = vector.shape_cast %85 : vector<1x8xbf16> to vector<1x1x8xbf16>
    tpu.vector_store %arg8[%c0_96, %c81, %c0_97], %88 {strides = array<i32>} : memref<2x82x8xbf16, #tpu.memory_space<vmem>>, vector<1x1x8xbf16>,
    %c1_98 = arith.constant 1 : index
    %c72_99 = arith.constant 72 : index
    %c0_100 = arith.constant 0 : index
    %89 = vector.load %arg8[%c1_98, %c72_99, %c0_100] : memref<2x82x8xbf16, #tpu.memory_space<vmem>>, vector<1x1x8xbf16>
    %90 = vector.shape_cast %89 : vector<1x1x8xbf16> to vector<1x8xbf16>
    %91 = vector.shape_cast %85 : vector<1x8xbf16> to vector<1x1x8xbf16>
    tpu.vector_store %arg8[%c1_98, %c72_99, %c0_100], %91 {strides = array<i32>} : memref<2x82x8xbf16, #tpu.memory_space<vmem>>, vector<1x1x8xbf16>,
    %c0_101 = arith.constant 0 : index
    %c0_102 = arith.constant 0 : index
    %c0_103 = arith.constant 0 : index
    %92 = vector.load %arg8[%c0_101, %c0_102, %c0_103] : memref<2x82x8xbf16, #tpu.memory_space<vmem>>, vector<1x72x8xbf16>
    %93 = vector.shape_cast %92 : vector<1x72x8xbf16> to vector<72x8xbf16>
    %c0_104 = arith.constant 0 : index
    %c0_105 = arith.constant 0 : index
    %c0_106 = arith.constant 0 : index
    %94 = vector.load %arg4[%c0_104, %c0_105, %c0_106] : memref<3x8x128xbf16, #tpu.memory_space<vmem>>, vector<1x8x128xbf16>
    %95 = vector.shape_cast %94 : vector<1x8x128xbf16> to vector<8x128xbf16>
    %cst_107 = arith.constant dense<0.000000e+00> : vector<72x128xf32>
    %96 = tpu.matmul %93, %95, %cst_107 {dimension_numbers = #tpu.dot_dimension_numbers<[1], [0], [0], [1], [0, 0, 1, 1], [], []>} : vector<72x8xbf16>, vector<8x128xbf16>, vector<72x128xf32> -> vector<72x128xf32>
    %c1_108 = arith.constant 1 : index
    %c0_109 = arith.constant 0 : index
    %c0_110 = arith.constant 0 : index
    %97 = vector.load %arg8[%c1_108, %c0_109, %c0_110] : memref<2x82x8xbf16, #tpu.memory_space<vmem>>, vector<1x72x8xbf16>
    %98 = vector.shape_cast %97 : vector<1x72x8xbf16> to vector<72x8xbf16>
    %c1_111 = arith.constant 1 : index
    %c0_112 = arith.constant 0 : index
    %c0_113 = arith.constant 0 : index
    %99 = vector.load %arg4[%c1_111, %c0_112, %c0_113] : memref<3x8x128xbf16, #tpu.memory_space<vmem>>, vector<1x8x128xbf16>
    %100 = vector.shape_cast %99 : vector<1x8x128xbf16> to vector<8x128xbf16>
    %cst_114 = arith.constant dense<0.000000e+00> : vector<72x128xf32>
    %101 = tpu.matmul %98, %100, %cst_114 {dimension_numbers = #tpu.dot_dimension_numbers<[1], [0], [0], [1], [0, 0, 1, 1], [], []>} : vector<72x8xbf16>, vector<8x128xbf16>, vector<72x128xf32> -> vector<72x128xf32>
    %102 = arith.addf %96, %101 : vector<72x128xf32>
    %c0_115 = arith.constant 0 : index
    %c9_116 = arith.constant 9 : index
    %c0_117 = arith.constant 0 : index
    %103 = vector.load %arg8[%c0_115, %c9_116, %c0_117] : memref<2x82x8xbf16, #tpu.memory_space<vmem>>, vector<1x72x8xbf16>
    %104 = vector.shape_cast %103 : vector<1x72x8xbf16> to vector<72x8xbf16>
    %c2_118 = arith.constant 2 : index
    %c0_119 = arith.constant 0 : index
    %c0_120 = arith.constant 0 : index
    %105 = vector.load %arg4[%c2_118, %c0_119, %c0_120] : memref<3x8x128xbf16, #tpu.memory_space<vmem>>, vector<1x8x128xbf16>
    %106 = vector.shape_cast %105 : vector<1x8x128xbf16> to vector<8x128xbf16>
    %cst_121 = arith.constant dense<0.000000e+00> : vector<72x128xf32>
    %107 = tpu.matmul %104, %106, %cst_121 {dimension_numbers = #tpu.dot_dimension_numbers<[1], [0], [0], [1], [0, 0, 1, 1], [], []>} : vector<72x8xbf16>, vector<8x128xbf16>, vector<72x128xf32> -> vector<72x128xf32>
    %108 = arith.addf %102, %107 : vector<72x128xf32>
    %c0_122 = arith.constant 0 : index
    %c1_123 = arith.constant 1 : index
    %c0_124 = arith.constant 0 : index
    %109 = vector.load %arg8[%c0_122, %c1_123, %c0_124] : memref<2x82x8xbf16, #tpu.memory_space<vmem>>, vector<1x72x4xbf16>
    %110 = vector.shape_cast %109 : vector<1x72x4xbf16> to vector<72x4xbf16>
    %c0_125 = arith.constant 0 : index
    %c0_126 = arith.constant 0 : index
    %c0_127 = arith.constant 0 : index
    %111 = vector.load %arg5[%c0_125, %c0_126, %c0_127] : memref<3x4x128xbf16, #tpu.memory_space<vmem>>, vector<1x4x128xbf16>
    %112 = vector.shape_cast %111 : vector<1x4x128xbf16> to vector<4x128xbf16>
    %cst_128 = arith.constant dense<0.000000e+00> : vector<72x128xf32>
    %113 = tpu.matmul %110, %112, %cst_128 {dimension_numbers = #tpu.dot_dimension_numbers<[1], [0], [0], [1], [0, 0, 1, 1], [], []>} : vector<72x4xbf16>, vector<4x128xbf16>, vector<72x128xf32> -> vector<72x128xf32>
    %114 = arith.addf %108, %113 : vector<72x128xf32>
    %c1_129 = arith.constant 1 : index
    %c1_130 = arith.constant 1 : index
    %c0_131 = arith.constant 0 : index
    %115 = vector.load %arg8[%c1_129, %c1_130, %c0_131] : memref<2x82x8xbf16, #tpu.memory_space<vmem>>, vector<1x72x4xbf16>
    %116 = vector.shape_cast %115 : vector<1x72x4xbf16> to vector<72x4xbf16>
    %c1_132 = arith.constant 1 : index
    %c0_133 = arith.constant 0 : index
    %c0_134 = arith.constant 0 : index
    %117 = vector.load %arg5[%c1_132, %c0_133, %c0_134] : memref<3x4x128xbf16, #tpu.memory_space<vmem>>, vector<1x4x128xbf16>
    %118 = vector.shape_cast %117 : vector<1x4x128xbf16> to vector<4x128xbf16>
    %cst_135 = arith.constant dense<0.000000e+00> : vector<72x128xf32>
    %119 = tpu.matmul %116, %118, %cst_135 {dimension_numbers = #tpu.dot_dimension_numbers<[1], [0], [0], [1], [0, 0, 1, 1], [], []>} : vector<72x4xbf16>, vector<4x128xbf16>, vector<72x128xf32> -> vector<72x128xf32>
    %120 = arith.addf %114, %119 : vector<72x128xf32>
    %c0_136 = arith.constant 0 : index
    %c10_137 = arith.constant 10 : index
    %c0_138 = arith.constant 0 : index
    %121 = vector.load %arg8[%c0_136, %c10_137, %c0_138] : memref<2x82x8xbf16, #tpu.memory_space<vmem>>, vector<1x72x4xbf16>
    %122 = vector.shape_cast %121 : vector<1x72x4xbf16> to vector<72x4xbf16>
    %c2_139 = arith.constant 2 : index
    %c0_140 = arith.constant 0 : index
    %c0_141 = arith.constant 0 : index
    %123 = vector.load %arg5[%c2_139, %c0_140, %c0_141] : memref<3x4x128xbf16, #tpu.memory_space<vmem>>, vector<1x4x128xbf16>
    %124 = vector.shape_cast %123 : vector<1x4x128xbf16> to vector<4x128xbf16>
    %cst_142 = arith.constant dense<0.000000e+00> : vector<72x128xf32>
    %125 = tpu.matmul %122, %124, %cst_142 {dimension_numbers = #tpu.dot_dimension_numbers<[1], [0], [0], [1], [0, 0, 1, 1], [], []>} : vector<72x4xbf16>, vector<4x128xbf16>, vector<72x128xf32> -> vector<72x128xf32>
    %126 = arith.addf %120, %125 : vector<72x128xf32>
    %c0_143 = arith.constant 0 : index
    %c0_144 = arith.constant 0 : index
    %127 = vector.load %arg6[%c0_143, %c0_144] : memref<1x128xf32, #tpu.memory_space<vmem>>, vector<1x128xf32>
    %128 = vector.broadcast %127 : vector<1x128xf32> to vector<72x128xf32>
    %129 = arith.addf %126, %128 : vector<72x128xf32>
    %c0_145 = arith.constant 0 : index
    %c0_146 = arith.constant 0 : index
    %c0_147 = arith.constant 0 : index
    %130 = vector.load %arg7[%c0_145, %c0_146, %c0_147] : memref<1x72x128xf32, #tpu.memory_space<vmem>>, vector<1x72x128xf32>
    %131 = vector.shape_cast %130 : vector<1x72x128xf32> to vector<72x128xf32>
    %132 = vector.shape_cast %129 : vector<72x128xf32> to vector<1x72x128xf32>
    tpu.vector_store %arg7[%c0_145, %c0_146, %c0_147], %132 {strides = array<i32>} : memref<1x72x128xf32, #tpu.memory_space<vmem>>, vector<1x72x128xf32>,
    return
  }
  func.func @transform_0(%arg0: i32, %arg1: i32) -> (i32, i32, i32, i32) {
    %c0_i32 = arith.constant 0 : i32
    %c0_i32_0 = arith.constant 0 : i32
    %c0_i32_1 = arith.constant 0 : i32
    return %arg0, %arg1, %c0_i32, %c0_i32_0 : i32, i32, i32, i32
  }
  func.func @transform_1(%arg0: i32, %arg1: i32) -> (i32, i32, i32, i32) {
    %c1_i32 = arith.constant 1 : i32
    %0 = arith.addi %arg1, %c1_i32 : i32
    %c2_i32 = arith.constant 2 : i32
    %1 = arith.muli %0, %c2_i32 : i32
    %c8_i32 = arith.constant 8 : i32
    %2 = arith.muli %1, %c8_i32 : i32
    %c0_i32 = arith.constant 0 : i32
    %c0_i32_0 = arith.constant 0 : i32
    %c0_i32_1 = arith.constant 0 : i32
    return %arg0, %2, %c0_i32, %c0_i32_0 : i32, i32, i32, i32
  }
  func.func @transform_2(%arg0: i32, %arg1: i32) -> (i32, i32, i32) {
    %c0_i32 = arith.constant 0 : i32
    %c0_i32_0 = arith.constant 0 : i32
    %c0_i32_1 = arith.constant 0 : i32
    %c0_i32_2 = arith.constant 0 : i32
    return %c0_i32, %c0_i32_0, %c0_i32_1 : i32, i32, i32
  }
  func.func @transform_3(%arg0: i32, %arg1: i32) -> (i32, i32, i32) {
    %c0_i32 = arith.constant 0 : i32
    %c0_i32_0 = arith.constant 0 : i32
    %c0_i32_1 = arith.constant 0 : i32
    %c0_i32_2 = arith.constant 0 : i32
    return %c0_i32, %c0_i32_0, %c0_i32_1 : i32, i32, i32
  }
  func.func @transform_4(%arg0: i32, %arg1: i32) -> (i32, i32) {
    %c0_i32 = arith.constant 0 : i32
    %c0_i32_0 = arith.constant 0 : i32
    %c0_i32_1 = arith.constant 0 : i32
    return %c0_i32, %c0_i32_0 : i32, i32
  }
  func.func @transform_5(%arg0: i32, %arg1: i32) -> (i32, i32, i32) {
    %c0_i32 = arith.constant 0 : i32
    %c0_i32_0 = arith.constant 0 : i32
    return %arg0, %arg1, %c0_i32 : i32, i32, i32
  }
}

</mosaic_0001>

<bundles_post_ra>
// kernel: tpu_custom_call.1
= control target key start
LH: loop header
LB: loop body
LE: loop exit
PB: predicated region body
PF: predicated region fallthrough
CT: control target
= control target key end

     0   :  { %10 = vsyncpa [#allocation4], 0  ;;  %s2287_s0 = inlined_call_operand.vmem [shape: bf16[2,18,9,8], index: 0, kind: input, shape index: {}]   ;;  %s2288_s1 = inlined_call_operand.vmem [shape: bf16[2,18,9,8], index: 1, kind: input, shape index: {}]   ;;  %s2289_s2 = inlined_call_operand.vmem [shape: bf16[3,8,128], index: 2, kind: input, shape index: {}]   ;;  %s2290_s3 = inlined_call_operand.vmem [shape: bf16[3,4,128], index: 3, kind: input, shape index: {}]   ;;  %s2291_s4 = inlined_call_operand.vmem [shape: f32[1,128], index: 4, kind: input, shape index: {}]   ;;  %s2292_s5 = inlined_call_operand.hbm [shape: f32[2,72,128], index: 5, kind: output, shape index: {}]  }
   0x1   :  { %12 = vsyncpa [#allocation4 + $0x1], 0  ;;  %s1841_s18 = smov 0   ;;  %s1843_s19 = smov 0  }
   0x2   :  { %s1845_s20 = smov 0   ;;  %s1847_s21 = smov 0  }
   0x3   :  { %s1849_s22 = smov 0   ;;  %s1851_s23 = smov 0  }
   0x4 LB: > { %s1475_s24 = sadd.s32 4294967295, %s1807_s23   ;;  %s1476_s25 = sadd.s32 4294967294, %s1807_s23   ;;  %s1807_s23 = sphi %s1851_s23, %s18_s23   ;;  %s1803_s22 = sphi %s1849_s22, %s2341_s22   ;;  %s1799_s21 = sphi %s1847_s21, %s2340_s21   ;;  %s1795_s20 = sphi %s1845_s20, %s2339_s20   ;;  %s1791_s19 = sphi %s1843_s19, %s2338_s19   ;;  %s1787_s18 = sphi %s1841_s18, %s2337_s18  }
   0x5   : > { %s30_s26 = sadd.s32 1, %s1803_s22  ;;  %s162_s27 = sadd.s32 1, %s1795_s20 }
   0x6   : > { %p32_p0 = scmp.ge.s32.totalorder %s30_s26, 2  ;;  %p172_p1 = scmp.ne.s32.totalorder %s1795_s20, %s1791_s19 }
   0x7   : > { %p173_p2 = scmp.eq.s32.totalorder %s1475_s24, 1  ;;  %p178_p3 = scmp.ne.s32.totalorder %s1791_s19, %s1787_s18 }
   0x8   : > { %s2343_s26 = smov (%p32_p0, %s30_s26), 0  ;;  %p179_p5 = scmp.eq.s32.totalorder %s1476_s25, 1 }
   0x9   : > { %p1881_p4 = por %p173_p2, %p172_p1  ;;  %s157_s29 = ssub.s32 %s1803_s22, %s2343_s26 }
   0xa   : > { %p1479_p6 = scmp.ge.s32.totalorder %s1807_s23, 1  ;;  %p160_p7 = scmp.eq.s32.totalorder %s157_s29, 0 }
   0xb   : > { %p1888_p8 = por %p179_p5, %p178_p3  ;;  %p246_p9 = scmp.lt.s32.totalorder %s1807_s23, 3 }
   0xc   : > { %s1894_s6 = scalar_select %p160_p7, %s1795_s20, %s162_s27  }
   0xd   : > { %p247_p10 = pnand %p1479_p6, %p246_p9 }
   0xe   : > { %p301_p11 = scmp.lt.s32.totalorder (!%p247_p10), %s1799_s21, 1  ;;  %s292_s13 = sand.u32 (!%p247_p10), 1, %s1791_s19  }
   0xf   : > { %250 = sbr.rel (%p247_p10) target bundleno = 315 (0x13b), region = 40 }
  0x10   : > { %s1663_s14 = smul.u32 (!%p247_p10), 72, %s292_s13 }
  0x11   : > { %s1666_s24 = smul.u32 (!%p247_p10), 72, %s1799_s21 }
  0x12   : > { %s2226_s17 = scalar_lea.vmem (!%p247_p10), [#allocation3], %s1663_s14  ;;  %s1749_s14 = scalar_lea.hbm (!%p247_p10), %s2292_s5, 144 }
  0x13   : > { %s1368_s29 = scalar_lea.hbm (!%p247_p10), %s2292_s5, %s1666_s24  ;;  %s1369_s7 = sshll.u32 (!%p247_p10), %s2226_s17, 4  ;;  %s1370_s7 = int_to_ptr.vmem [resolvable:$true] %s1369_s7 }
  0x14   : > { %v1512_v0 = vld [vmem:[%s2289_s2 + $0x4] sm:$0xf]  ;;  %vm735_vm0 = vcmask 1043456   ;;  %v684_v1 = vld [vmem:[%s2289_s2] sm:$0xf]  ;;  %s302_s11 = scalar_select %p301_p11, %s1799_s21, 1 }
  0x15   : > { %v737_v2 = vsel %vm735_vm0, %v1512_v0, 0  ;;  %v811_v3 = vsel %vm735_vm0, %v684_v1, 0  ;;  %vm2293_vm1 = vcmask 57344   ;;  %vm2294_vm2 = vsmask.f32 256  ;;  %s1371_s8 = sshll.u32 %s1368_s29, 4  ;;  %s1372_s8 = int_to_ptr.hbm [resolvable:$true] %s1371_s8 }
  0x16   : > { %746 = vmatpush.bf16.msra.mxu0 %v737_v2  ;;  %820 = vmatpush.bf16.msra.mxu1 %v811_v3  ;;  %s1664_s12 = smul.u32 144, %s302_s11  ;;  %v346_v4 = vld [vmem:[#allocation2 + $0x30] sm:$0x1]  ;;  %vm369_vm3 = vsmask.f32 7938  ;;  %vm1908_vm4 = vmand %vm2293_vm1, %vm2294_vm2  ;;  %vm2296_vm5 = vcmask 60416  }
  0x17   : > { %1661 = vmatpush.bf16.msra.mxu2 %v737_v2  ;;  %1662 = vmatpush.bf16.msra.mxu3 %v811_v3  ;;  %v665_v6 = vld [vmem:[#allocation2 + $0x28] sm:$0x1]  ;;  %v338_v7 = vld [vmem:[#allocation2 + $0x4] sm:$0x1]  ;;  %vm2295_vm6 = vcmask 1041408   ;;  %vm492_vm7 = vcmask 1045508   ;;  %vm1940_vm10 = vmand %vm2296_vm5, %vm369_vm3 }
  0x18   : > { %s1915_s15 = scalar_lea.vmem %s2287_s0, %s1664_s12  ;;  %s1638_s16 = sadd.s32 128, %s1664_s12  ;;  %vm503_vm8 = vsmask.f32 2304  ;;  %vm500_vm9 = vcmask 60418   ;;  %vm502_vm11 = vcmask 59392   ;;  %vm1948_vm13 = vmand %vm2293_vm1, %vm369_vm3  ;;  %vm581_vm1 = vcmask 1046532  }
  0x19   : > { %s1920_s25 = scalar_lea.vmem %s2288_s1, %s1638_s16  ;;  %v1482_v8 = vld [vmem:[%s1915_s15 + $0x8] sm:$0xf]  ;;  %v1483_v9 = vld [vmem:[%s1915_s15 + $0xc] sm:$0x1]  ;;  %v1486_v10 = vld [vmem:[%s1915_s15 + $0x18] sm:$0xf] }
  0x1a   : > { %345 = vst.msk [vmem:[#allocation2 + $0x2c] sm:$0xf] %vm2296_vm5, %v1482_v8  ;;  %v347_v11 = vsel %vm1908_vm4, %v1483_v9, %v346_v4  ;;  %v380_v12 = vshrl.u32 %v1486_v10, 16  ;;  %v383_v13 = vshll.u32 %v1486_v10, 16  ;;  %v663_v14 = vld [vmem:[%s1920_s25 + $0x4] sm:$0x1]  ;;  %vm1958_vm14 = vmor %vm2295_vm6, %vm492_vm7 }
  0x1b   : > { %348 = vst [vmem:[#allocation2 + $0x30] sm:$0x1] %v347_v11  ;;  %v666_v15 = vsel %vm1908_vm4, %v663_v14, %v665_v6  ;;  %v331_v16 = vld [vmem:[%s1915_s15] sm:$0xf]  ;;  %v332_v17 = vld [vmem:[%s1915_s15 + $0x4] sm:$0x1]  ;;  %vm1967_vm3 = vmand %vm502_vm11, %vm503_vm8 }
  0x1c   : > { %v1933_v18 = vrot.slane %v380_v12, 7  ;;  %667 = vst [vmem:[#allocation2 + $0x28] sm:$0x1] %v666_v15  ;;  %v339_v19 = vsel %vm1908_vm4, %v332_v17, %v338_v7  ;;  %v1484_v20 = vld [vmem:[%s1915_s15 + $0x10] sm:$0xf]  ;;  %vm580_vm7 = vcmask 1042432  }
  0x1d   : > { %334 = vst.msk [vmem:[#allocation2] sm:$0xf] %vm2296_vm5, %v331_v16  ;;  %v355_v22 = vshrl.u32 %v1484_v20, 16  ;;  %v1496_v23 = vld [vmem:[%s1915_s15 + $0x40] sm:$0xf]  ;;  %v358_v25 = vshll.u32 %v1484_v20, 16 }
  0x1e   : > { %vm526_vm12 = vsmask.f32 6416  ;;  %340 = vst [vmem:[#allocation2 + $0x4] sm:$0x1] %v339_v19  ;;  %v1497_v26 = vld [vmem:[%s1915_s15 + $0x44] sm:$0x1]  ;;  %v385_v29 = vor.u32 %v383_v13, %v1933_v18 }
  0x1f   : > { %v494_v27 = vrot.slane %v1496_v23, 6  ;;  %v505_v28 = vld [vmem:[#allocation2 + $0x14] sm:$0x7]  ;;  %v1954_v30 = vrot.slane %v355_v22, 7  ;;  %v496_v32 = vrot.slane %v1497_v26, 6  ;;  %vm719_vm2 = vcmask 64512  }
  0x20   : > { %v1498_v33 = vld [vmem:[%s1915_s15 + $0x48] sm:$0xf]  ;;  %v1499_v34 = vld [vmem:[%s1915_s15 + $0x4c] sm:$0x1]  ;;  %vm545_vm15 = vsmask.f32 7946 }
  0x21   : > { %v495_v35 = vrot.slane %v494_v27, 4  ;;  %501 = vst.msk [vmem:[#allocation2 + $0x10] sm:$0xc] %vm500_vm9, %v494_v27  ;;  %v513_v37 = vrot.slane %v1498_v33, 6  ;;  %v515_v38 = vrot.slane %v1499_v34, 6  ;;  %v360_v44 = vor.u32 %v358_v25, %v1954_v30  ;;  %s1355_s21 = scalar_lea.sflag [#allocation4], %s292_s13 }
  0x22   : > { %v520_v39 = vld [vmem:[#allocation2 + $0x40] sm:$0x7]  ;;  %v1500_v40 = vld [vmem:[%s1915_s15 + $0x50] sm:$0xf]  ;;  %v1501_v41 = vld [vmem:[%s1915_s15 + $0x54] sm:$0x1] }
  0x23   : > { %v1502_v42 = vld [vmem:[%s1915_s15 + $0x58] sm:$0xf]  ;;  %v393_v43 = vld [vmem:[#allocation2 + $0x30] sm:$0xf]  ;;  %v497_v45 = vsel %vm1958_vm14, %v495_v35, %v496_v32  ;;  %v514_v46 = vrot.slane %v513_v37, 4  ;;  %v529_v47 = vshrl.u32 %v1500_v40, 16 }
  0x24   : > { %519 = vst.msk [vmem:[#allocation2 + $0x3c] sm:$0xc] %vm500_vm9, %v513_v37  ;;  %v394_v48 = vsel %vm1940_vm10, %v385_v29, %v393_v43  ;;  %v669_v49 = vld [vmem:[#allocation2 + $0x28] sm:$0x1]  ;;  %v506_v50 = vsel %vm1967_vm3, %v497_v45, %v505_v28  ;;  %v532_v51 = vshll.u32 %v1500_v40, 16  ;;  %v538_v52 = vshll.u32 %v1501_v41, 16 }
  0x25   : > { %v1503_v53 = vld [vmem:[%s1915_s15 + $0x5c] sm:$0x1]  ;;  %395 = vst [vmem:[#allocation2 + $0x30] sm:$0xf] %v394_v48  ;;  %v670_v54 = vsel %vm1948_vm13, 0, %v669_v49  ;;  %v516_v55 = vsel %vm1958_vm14, %v514_v46, %v515_v38  ;;  %v531_v56 = vrot.slane %v529_v47, 5 }
  0x26   : > { %v556_v57 = vshrl.u32 %v1502_v42, 16  ;;  %671 = vst [vmem:[#allocation2 + $0x28] sm:$0x1] %v670_v54  ;;  %v371_v58 = vld [vmem:[#allocation2 + $0x4] sm:$0xf]  ;;  %v521_v59 = vsel %vm1967_vm3, %v516_v55, %v520_v39  ;;  %v534_v60 = vrot.slane %v532_v51, 6  ;;  %vm2008_vm3 = vmand %vm500_vm9, %vm545_vm15 }
  0x27   : > { %v540_v61 = vrot.slane %v538_v52, 6  ;;  %v372_v62 = vsel %vm1940_vm10, %v360_v44, %v371_v58  ;;  %507 = vst [vmem:[#allocation2 + $0x14] sm:$0x7] %v506_v50  ;;  %v559_v0 = vshll.u32 %v1502_v42, 16  ;;  %v565_v1 = vshll.u32 %v1503_v53, 16  ;;  %vm1999_vm10 = vmor %vm503_vm8, %vm526_vm12  ;;  %s1743_s9 = sshra.s32 %s1372_s8, 4  ;;  %s1744_s9 = int_to_ptr.hbm [resolvable:$true] %s1743_s9 }
  0x28   : > { %v558_v63 = vrot.slane %v556_v57, 5  ;;  %373 = vst [vmem:[#allocation2 + $0x4] sm:$0xf] %v372_v62  ;;  %v535_v2 = vor.u32 %v534_v60, %v531_v56  ;;  %v1602_v3 = vld [vmem:[%s2290_s3 + $0x2] sm:$0x3]  ;;  %vm589_vm13 = vcmask 60419   ;;  %p1750_p1 = scmp.lt.s32.totalorder %s1744_s9, %s2292_s5 }
  0x29   : > { %v1628_v4 = vld [vmem:[%s2290_s3 + $0x4] sm:$0x3]  ;;  %522 = vst [vmem:[#allocation2 + $0x40] sm:$0x7] %v521_v59  ;;  %v561_v7 = vrot.slane %v559_v0, 6  ;;  %v1212_v8 = vsel %vm2295_vm6, %v1602_v3, 0 }
  0x2a   : > { %v1288_v9 = vsel %vm2295_vm6, %v1628_v4, 0  ;;  %v536_v10 = vrot.slane %v535_v2, 4  ;;  %v567_v11 = vrot.slane %v565_v1, 6  ;;  %1221 = vmatpush.bf16.msrb.mxu0 %v1212_v8  ;;  %vm591_vm14 = vsmask.f32 3328  ;;  %vm2018_vm6 = vmor %vm580_vm7, %vm581_vm1  ;;  %s1745_s10 = scalar_lea.hbm %s1744_s9, 72 }
  0x2b   : > { %1297 = vmatpush.bf16.msrb.mxu1 %v1288_v9  ;;  %v1506_v12 = vld [vmem:[%s1915_s15 + $0x68] sm:$0xf]  ;;  %v562_v14 = vor.u32 %v561_v7, %v558_v63  ;;  %v1507_v15 = vld [vmem:[%s1915_s15 + $0x6c] sm:$0x1]  ;;  %v386_v19 = vrot.slane %v1933_v18, 4  ;;  %vm403_vm12 = vcmask 1044484   ;;  %vm2026_vm15 = vmand %vm2296_vm5, %vm591_vm14  ;;  %p1746_p12 = scmp.ne.s32.totalorder %s1744_s9, %s1745_s10  ;;  %p1751_p2 = scmp.lt.s32.totalorder %s1749_s14, %s1745_s10 }
  0x2c   : > { %v601_v16 = vrot.slane %v1506_v12, 5  ;;  %v608_v17 = vld [vmem:[#allocation2 + $0x48] sm:$0xf]  ;;  %v1643_v20 = vld [vmem:[#allocation2 + $0x2c] sm:$0xff]  ;;  %v541_v21 = vsel %vm1999_vm10, %v536_v10, %v540_v61  ;;  %v603_v23 = vrot.slane %v1507_v15, 5  ;;  %vm413_vm8 = vcmask 58368  }
  0x2d   : > { %vm633_vm9 = vsmask.f32 7950  ;;  %v1510_v24 = vld [vmem:[%s1915_s15 + $0x78] sm:$0xf]  ;;  %551 = vst.msk [vmem:[#allocation2 + $0x18] sm:$0x7] %vm502_vm11, %v541_v21  ;;  %1529 = vmatmul.msk.bf16.vlgmr.msra.gmra.mxu0 %vm719_vm2, %v1643_v20  ;;  %p1747_p13 = pnand %p1746_p12, %p1881_p4  ;;  %p1752_p3 = por %p1751_p2, %p1750_p1 }
  0x2e   : > { %v563_v25 = vrot.slane %v562_v14, 4  ;;  %v602_v27 = vrot.slane %v601_v16, 4  ;;  %v643_v28 = vshll.u32 %v1510_v24, 16  ;;  %v361_v29 = vrot.slane %v1954_v30, 4  ;;  %v547_v31 = vld [vmem:[#allocation2 + $0x14] sm:$0xc] }
  0x2f   : > { %607 = vst.msk [vmem:[#allocation2 + $0x44] sm:$0x8] %vm589_vm13, %v601_v16  ;;  %v1504_v32 = vld [vmem:[%s1915_s15 + $0x60] sm:$0xf]  ;;  %v548_v34 = vsel %vm2008_vm3, %v535_v2, %v547_v31  ;;  %v1505_v38 = vld [vmem:[%s1915_s15 + $0x64] sm:$0x1]  ;;  %p1748_p0 = pneg %p1747_p13 }
  0x30   : > { %v1639_v33 = vld [vmem:[#allocation2] sm:$0xff]  ;;  %v568_v35 = vsel %vm1999_vm10, %v563_v25, %v567_v11  ;;  %v604_v36 = vsel %vm2018_vm6, %v602_v27, %v603_v23  ;;  %v2040_v37 = vrot.slane %v643_v28, 5  ;;  %549 = vst [vmem:[#allocation2 + $0x14] sm:$0xc] %v548_v34  ;;  %v583_v41 = vrot.slane %v1504_v32, 5 }
  0x31   : > { %v571_v39 = vld [vmem:[#allocation2 + $0x40] sm:$0xc]  ;;  %v609_v40 = vsel %vm2026_vm15, %v604_v36, %v608_v17  ;;  %v585_v42 = vrot.slane %v1505_v38, 5  ;;  %v593_v43 = vld [vmem:[#allocation2 + $0x1c] sm:$0xf]  ;;  %vm411_vm1 = vcmask 60417   ;;  %1550 = vmatmul.msk.bf16.vlgmr.msra.gmra.mxu1 %vm719_vm2, %v1639_v33  ;;  %p1753_p5 = pnand %p1752_p3, %p1748_p0 }
  0x32   : > { %v572_v44 = vsel %vm2008_vm3, %v562_v14, %v571_v39  ;;  %574 = vst.msk [vmem:[#allocation2 + $0x44] sm:$0x7] %vm502_vm11, %v568_v35  ;;  %v1508_v45 = vld [vmem:[%s1915_s15 + $0x70] sm:$0xf]  ;;  %v1555_v46 = vld [vmem:[%s2289_s2 + $0x8] sm:$0xf] }
  0x33   : > { %573 = vst [vmem:[#allocation2 + $0x40] sm:$0xc] %v572_v44  ;;  %v584_v47 = vrot.slane %v583_v41, 4  ;;  %v617_v48 = vshll.u32 %v1508_v45, 16  ;;  %v939_v49 = vsel %vm735_vm0, %v1555_v46, 0  ;;  %v646_v50 = vshrl.u32 %v1510_v24, 16 }
  0x34   : > { %610 = vst [vmem:[#allocation2 + $0x48] sm:$0xf] %v609_v40  ;;  %948 = vmatpush.bf16.msrb.mxu2 %v939_v49  ;;  %v993_v51 = vld [vmem:[%s2290_s3] sm:$0x3]  ;;  %vm352_vm11 = vsmask.f32 4368 }
  0x35   : > { %v586_v52 = vsel %vm2018_vm6, %v584_v47, %v585_v42  ;;  %590 = vst.msk [vmem:[#allocation2 + $0x18] sm:$0x8] %vm589_vm13, %v583_v41  ;;  %v619_v53 = vrot.slane %v617_v48, 5  ;;  %vm2317_vm7 = vcmask 1041408   ;;  %vm2318_vm10 = vsmask.f32 256 }
  0x36   : > { %v1076_v54 = vsel %vm2317_vm7, %v993_v51, 0  ;;  %vm2062_vm0 = vmor %vm2318_vm10, %vm352_vm11  ;;  %v1487_v56 = vld [vmem:[%s1915_s15 + $0x1c] sm:$0x1]  ;;  %v594_v57 = vsel %vm2026_vm15, %v586_v52, %v593_v43  ;;  %vm414_vm3 = vsmask.f32 1280  ;;  %v648_v60 = vrot.slane %v646_v50, 4 }
  0x37   : > { %1085 = vmatpush.bf16.msrb.mxu3 %v1076_v54  ;;  %v388_v58 = vshll.u32 %v1487_v56, 16  ;;  %v1490_v59 = vld [vmem:[%s1915_s15 + $0x28] sm:$0xf]  ;;  %595 = vst [vmem:[#allocation2 + $0x1c] sm:$0xf] %v594_v57  ;;  %vm2321_vm6 = vcmask 1040384   ;;  %vm2079_vm15 = vmand %vm589_vm13, %vm633_vm9 }
  0x38   : > { %vm2072_vm5 = vmor %vm2321_vm6, %vm403_vm12  ;;  %v1491_v62 = vld [vmem:[%s1915_s15 + $0x2c] sm:$0x1]  ;;  %v424_v63 = vrot.slane %v1490_v59, 7  ;;  %v620_v0 = vshrl.u32 %v1508_v45, 16  ;;  %v431_v4 = vld [vmem:[#allocation2 + $0x38] sm:$0x3]  ;;  %v649_v6 = vor.u32 %v648_v60, %v2040_v37 }
  0x39   : > { %v390_v2 = vsel %vm2062_vm0, %v386_v19, %v388_v58  ;;  %v426_v3 = vrot.slane %v1491_v62, 7  ;;  %vm456_vm12 = vsmask.f32 7942  ;;  %vm2326_vm11 = vcmask 57344   ;;  %vm2091_vm7 = vmand %vm413_vm8, %vm414_vm3  ;;  %v1494_v9 = vld [vmem:[%s1915_s15 + $0x38] sm:$0xf] }
  0x3a   : > { %396 = vst.msk [vmem:[#allocation2 + $0x34] sm:$0x1] %vm2326_vm11, %v390_v2  ;;  %v425_v8 = vrot.slane %v424_v63, 4  ;;  %v622_v18 = vrot.slane %v620_v0, 4  ;;  %v467_v10 = vshrl.u32 %v1494_v9, 16  ;;  %v470_v11 = vshll.u32 %v1494_v9, 16  ;;  %vm2329_vm13 = vmmov %vm2326_vm11 }
  0x3b   : > { %430 = vst.msk [vmem:[#allocation2 + $0x34] sm:$0xe] %vm411_vm1, %v424_v63  ;;  %v1485_v12 = vld [vmem:[%s1915_s15 + $0x14] sm:$0x1]  ;;  %v658_v13 = vld [vmem:[#allocation2 + $0x48] sm:$0x8] }
  0x3c   : > { %v427_v14 = vsel %vm2072_vm5, %v425_v8, %v426_v3  ;;  %v363_v15 = vshll.u32 %v1485_v12, 16  ;;  %v1488_v16 = vld [vmem:[%s1915_s15 + $0x20] sm:$0xf]  ;;  %v650_v17 = vrot.slane %v649_v6, 4  ;;  %v623_v19 = vor.u32 %v622_v18, %v619_v53  ;;  %v1489_v24 = vld [vmem:[%s1915_s15 + $0x24] sm:$0x1] }
  0x3d   : > { %v659_v20 = vsel %vm2079_vm15, %v2040_v37, %v658_v13  ;;  %v432_v21 = vsel %vm2091_vm7, %v427_v14, %v431_v4  ;;  %v469_v22 = vrot.slane %v467_v10, 6  ;;  %v472_v23 = vrot.slane %v470_v11, 7  ;;  %v416_v28 = vld [vmem:[#allocation2 + $0xc] sm:$0x3]  ;;  %v1492_v31 = vld [vmem:[%s1915_s15 + $0x30] sm:$0xf] }
  0x3e   : > { %660 = vst [vmem:[#allocation2 + $0x48] sm:$0x8] %v659_v20  ;;  %v365_v25 = vsel %vm2062_vm0, %v361_v29, %v363_v15  ;;  %v405_v26 = vrot.slane %v1488_v16, 7  ;;  %v407_v27 = vrot.slane %v1489_v24, 7  ;;  %v635_v32 = vld [vmem:[#allocation2 + $0x1c] sm:$0x8] }
  0x3f   : > { %433 = vst [vmem:[#allocation2 + $0x38] sm:$0x3] %v432_v21  ;;  %v473_v33 = vor.u32 %v472_v23, %v469_v22  ;;  %v440_v34 = vshrl.u32 %v1492_v31, 16  ;;  %v443_v35 = vshll.u32 %v1492_v31, 16  ;;  %v636_v36 = vsel %vm2079_vm15, %v619_v53, %v635_v32  ;;  %v1511_v39 = vld [vmem:[%s1915_s15 + $0x7c] sm:$0x1] }
  0x40   : > { %375 = vst.msk [vmem:[#allocation2 + $0x8] sm:$0x1] %vm2329_vm13, %v365_v25  ;;  %v406_v30 = vrot.slane %v405_v26, 4  ;;  %vm614_vm9 = vsmask.f32 7440  ;;  %v624_v29 = vrot.slane %v623_v19, 4 }
  0x41   : > { %637 = vst [vmem:[#allocation2 + $0x1c] sm:$0x8] %v636_v36  ;;  %v442_v37 = vrot.slane %v440_v34, 6  ;;  %v445_v38 = vrot.slane %v443_v35, 7  ;;  %v652_v41 = vshll.u32 %v1511_v39, 16  ;;  %v474_v43 = vrot.slane %v473_v33, 4  ;;  %vm2123_vm10 = vmor %vm591_vm14, %vm614_vm9 }
  0x42   : > { %v408_v40 = vsel %vm2072_vm5, %v406_v30, %v407_v27  ;;  %412 = vst.msk [vmem:[#allocation2 + $0x8] sm:$0xe] %vm411_vm1, %v405_v26  ;;  %v1509_v42 = vld [vmem:[%s1915_s15 + $0x74] sm:$0x1]  ;;  %vm437_vm0 = vsmask.f32 5392  ;;  %vm2130_vm5 = vmand %vm411_vm1, %vm456_vm12 }
  0x43   : > { %v417_v44 = vsel %vm2091_vm7, %v408_v40, %v416_v28  ;;  %v446_v45 = vor.u32 %v445_v38, %v442_v37  ;;  %v626_v47 = vshll.u32 %v1509_v42, 16  ;;  %v1495_v48 = vld [vmem:[%s1915_s15 + $0x3c] sm:$0x1]  ;;  %v654_v50 = vrot.slane %v652_v41, 5  ;;  %v1493_v52 = vld [vmem:[%s1915_s15 + $0x34] sm:$0x1]  ;;  %vm438_vm14 = vmor %vm414_vm3, %vm437_vm0 }
  0x44   : > { %418 = vst [vmem:[#allocation2 + $0xc] sm:$0x3] %v417_v44  ;;  %v476_v51 = vshll.u32 %v1495_v48, 16  ;;  %v449_v56 = vshll.u32 %v1493_v52, 16  ;;  %vm2334_vm1 = vcmask 60416   ;;  %v1651_v14 = vld [vmem:[#allocation2] sm:$0xff] }
  0x45   : > { %v1646_v53 = vld [vmem:[#allocation2 + $0x44] sm:$0xff]  ;;  %v628_v54 = vrot.slane %v626_v47, 5  ;;  %v447_v55 = vrot.slane %v446_v45, 4  ;;  %v655_v58 = vsel %vm2123_vm10, %v650_v17, %v654_v50  ;;  %vm2335_vm3 = vmmov %vm2334_vm1  ;;  %v1022_v19 = vshll.u32 %v1651_v14, 16  ;;  %v1656_v24 = vld [vmem:[#allocation2 + $0x2c] sm:$0xff] }
  0x46   : > { %v482_v57 = vld [vmem:[#allocation2 + $0x38] sm:$0xe]  ;;  %v478_v59 = vrot.slane %v476_v51, 7  ;;  %1532 = vmatmul.msk.bf16.vlgmr.msra.gmra.mxu2 %vm719_vm2, %v1646_v53  ;;  %661 = vst.msk [vmem:[#allocation2 + $0x4c] sm:$0xf] %vm2334_vm1, %v655_v58  ;;  %v451_v62 = vrot.slane %v449_v56, 7  ;;  %vm2336_vm15 = vmmov %vm2334_vm1 }
  0x47   : > { %v483_v60 = vsel %vm2130_vm5, %v473_v33, %v482_v57  ;;  %v629_v61 = vsel %vm2123_vm10, %v624_v29, %v628_v54  ;;  %v1020_v25 = vshrl.u32 %v1651_v14, 16  ;;  %v1024_v26 = vrot.slane %v1022_v19, 1  ;;  %v1727_v29 = vld [vmem:[#allocation2 + $0x4] sm:$0xe]  ;;  %v2162_v41 = vld [vmem:[#allocation2 + $0x14] sm:$0xff] }
  0x48   : > { %v1642_v63 = vld [vmem:[#allocation2 + $0x18] sm:$0xff]  ;;  %484 = vst [vmem:[#allocation2 + $0x38] sm:$0xe] %v483_v60  ;;  %v479_v0 = vsel %vm438_vm14, %v474_v43, %v478_v59  ;;  %v452_v1 = vsel %vm438_vm14, %v447_v55, %v451_v62  ;;  %v1160_v34 = vshll.u32 %v1656_v24, 16  ;;  %v1158_v37 = vshrl.u32 %v1656_v24, 16 }
  0x49   : > { %638 = vst.msk [vmem:[#allocation2 + $0x20] sm:$0xf] %vm2335_vm3, %v629_v61  ;;  %1553 = vmatmul.msk.bf16.vlgmr.msra.gmra.mxu3 %vm719_vm2, %v1642_v63  ;;  %v846_v4 = vld [vmem:[#allocation2 + $0x4] sm:$0xff]   ;;  %v1025_v35 = vor.u32 %v1024_v26, %v1020_v25  ;;  %vm1058_vm6 = vcmask 31744   ;;  %v662_v46 = vld [vmem:[%s1920_s25] sm:$0xf] }
  0x4a   : > { %485 = vst.msk [vmem:[#allocation2 + $0x3c] sm:$0x3] %vm413_vm8, %v479_v0  ;;  %v1726_v6 = vld [vmem:[#allocation2 + $0x4] sm:$0xf0]  ;;  %v887_v16 = vshll.u32 %v846_v4, 16  ;;  %v885_v20 = vshrl.u32 %v846_v4, 16 }
  0x4b   : > { %v458_v2 = vld [vmem:[#allocation2 + $0xc] sm:$0xe]  ;;  %462 = vst.msk [vmem:[#allocation2 + $0x10] sm:$0x3] %vm413_vm8, %v452_v1  ;;  %vm883_vm8 = vsmask.f32 7424  ;;  %v1728_v44 = vor.u32 %v1727_v29, %v1726_v6 }
  0x4c   : > { %v459_v3 = vsel %vm2130_vm5, %v446_v45, %v458_v2  ;;  %v889_v21 = vrot.slane %v887_v16, 1  ;;  %v1162_v38 = vrot.slane %v1160_v34, 1  ;;  %v900_v48 = vshll.u32 %v2162_v41, 16  ;;  %664 = vst.msk [vmem:[#allocation2 + $0x24] sm:$0xf] %vm2336_vm15, %v662_v46  ;;  %v1654_v6 = vld [vmem:[#allocation2 + $0x18] sm:$0xff] }
  0x4d   : > { %460 = vst [vmem:[#allocation2 + $0xc] sm:$0xe] %v459_v3  ;;  %v693_v7 = vld [vmem:[#allocation2 + $0x4c] sm:$0xf]  ;;  %v1263_v50 = vrot.slane %v1728_v44, 1  ;;  %vm1262_vm12 = vcmask 1046528  }
  0x4e   : > { %v713_v9 = vunpack.c.l.b16 %v693_v7  ;;  %v890_v28 = vor.u32 %v889_v21, %v885_v20  ;;  %v1163_v42 = vor.u32 %v1162_v38, %v1158_v37  ;;  %v902_v55 = vrot.slane %v900_v48, 1  ;;  %v672_v61 = vld [vmem:[#allocation2 + $0x50] sm:$0x1]  ;;  %v1650_v20 = vld [vmem:[#allocation2 + $0x24] sm:$0x10] }
  0x4f   : > { %v1644_v8 = vld [vmem:[#allocation2 + $0x34] sm:$0xff]  ;;  %v673_v0 = vsel %vm1908_vm4, 0, %v672_v61  ;;  %v904_v7 = vshrl.u32 %v2162_v41, 16  ;;  %v1266_v5 = vrot.slane %v2162_v41, 1  ;;  %v1621_v29 = vld [vmem:[#allocation2 + $0x4c] sm:$0xf] }
  0x50   : > { %v683_v18 = vld [vmem:[#allocation2 + $0x20] sm:$0xf]  ;;  %1530 = vmatmul.msk.bf16.gmra.mxu0 %vm719_vm2, %v1644_v8  ;;  %v718_v11 = vpack.c.b16 %v713_v9, %v713_v9  ;;  %v1657_v33 = vld [vmem:[#allocation2 + $0x34] sm:$0xff]  ;;  %674 = vst [vmem:[#allocation2 + $0x50] sm:$0x1] %v673_v0 }
  0x51   : > { %v789_v10 = vunpack.c.l.b16 %v683_v18  ;;  %v1645_v23 = vld [vmem:[#allocation2 + $0x3c] sm:$0xff]  ;;  %v1165_v39 = vshll.u32 %v1657_v33, 16  ;;  %v1169_v62 = vshrl.u32 %v1657_v33, 16 }
  0x52   : > { %v1641_v32 = vld [vmem:[#allocation2 + $0x10] sm:$0xff]  ;;  %v1658_v56 = vld [vmem:[#allocation2 + $0x3c] sm:$0xff] }
  0x53   : > { %v794_v13 = vpack.c.b16 %v789_v10, %v789_v10  ;;  %v1167_v43 = vrot.slane %v1165_v39, 1  ;;  %v1653_v45 = vld [vmem:[#allocation2 + $0x10] sm:$0xff]  ;;  %v1173_v63 = vshll.u32 %v1658_v56, 16  ;;  %v2179_v2 = vld [vmem:[#allocation2 + $0x1c] sm:$0xff]  ;;  %v1043_v10 = vshll.u32 %v1654_v6, 16 }
  0x54   : > { %v1640_v12 = vld [vmem:[#allocation2 + $0x8] sm:$0xff]  ;;  %v1035_v53 = vshll.u32 %v1653_v45, 16  ;;  %v908_v8 = vshll.u32 %v2179_v2, 16  ;;  %v1039_v18 = vshrl.u32 %v1653_v45, 16  ;;  %v1570_v19 = vld [vmem:[#allocation2 + $0x24] sm:$0xf] }
  0x55   : > { %1551 = vmatmul.msk.bf16.gmra.mxu1 %vm719_vm2, %v1640_v12  ;;  %v2153_v15 = vld [vmem:[#allocation2 + $0xc] sm:$0xff]  ;;  %v1168_v49 = vsel %vm883_vm8, %v1163_v42, %v1167_v43  ;;  %v1171_v3 = vor.u32 %v1169_v62, %v1167_v43  ;;  %v1175_v4 = vrot.slane %v1173_v63, 1  ;;  %v1045_v16 = vrot.slane %v1043_v10, 1  ;;  %v1595_v25 = vld [vmem:[#allocation2 + $0x20] sm:$0xf] }
  0x56   : > { %1533 = vmatmul.msk.bf16.gmra.mxu2 %vm719_vm2, %v718_v11  ;;  %v1652_v17 = vld [vmem:[#allocation2 + $0x8] sm:$0xff]  ;;  %v892_v22 = vshll.u32 %v2153_v15, 16  ;;  %v896_v47 = vshrl.u32 %v2153_v15, 16  ;;  %v1264_v51 = vrot.slane %v2153_v15, 1  ;;  %v1037_v59 = vrot.slane %v1035_v53, 1 }
  0x57   : > { %v1027_v27 = vshll.u32 %v1652_v17, 16  ;;  %v1031_v52 = vshrl.u32 %v1652_v17, 16  ;;  %v1176_v9 = vsel %vm883_vm8, %v1171_v3, %v1175_v4  ;;  %v906_v11 = vor.u32 %v904_v7, %v902_v55  ;;  %v1655_v26 = vld [vmem:[#allocation2 + $0x20] sm:$0x10]  ;;  %v1660_v37 = vld [vmem:[#allocation2 + $0x4c] sm:$0x10] }
  0x58   : > { %v894_v31 = vrot.slane %v892_v22, 1  ;;  %v1265_v57 = vsel %vm1262_vm12, %v1263_v50, %v1264_v51  ;;  %v910_v12 = vrot.slane %v908_v8, 1  ;;  %v1267_v14 = vsel %vm1262_vm12, %v1264_v51, %v1266_v5 }
  0x59   : > { %1554 = vmatmul.msk.bf16.gmra.mxu3 %vm719_vm2, %v794_v13  ;;  %v1029_v36 = vrot.slane %v1027_v27, 1  ;;  %v1659_v13 = vld [vmem:[#allocation2 + $0x44] sm:$0xff]  ;;  %v1041_v15 = vor.u32 %v1039_v18, %v1037_v59  ;;  %v1177_v21 = vshrl.u32 %v1658_v56, 16  ;;  %v1571_v24 = vor.u32 %v1650_v20, %v1570_v19 }
  0x5a   : > { %v895_v30 = vsel %vm883_vm8, %v890_v28, %v894_v31  ;;  %v898_v54 = vor.u32 %v896_v47, %v894_v31  ;;  %v911_v17 = vsel %vm883_vm8, %v906_v11, %v910_v12  ;;  %v1181_v22 = vshll.u32 %v1659_v13, 16 }
  0x5b   : > { %v1030_v40 = vsel %vm883_vm8, %v1025_v35, %v1029_v36  ;;  %v1033_v58 = vor.u32 %v1031_v52, %v1029_v36  ;;  %v1179_v27 = vor.u32 %v1177_v21, %v1175_v4  ;;  %v1596_v31 = vor.u32 %v1655_v26, %v1595_v25  ;;  %v2223_v26 = vld [vmem:[%s2291_s4] ss:$0 sm:$0xff] }
  0x5c   : > { %v903_v60 = vsel %vm883_vm8, %v898_v54, %v902_v55  ;;  %v1183_v28 = vrot.slane %v1181_v22, 1  ;;  %v916_v33 = vshll.u32 %v1571_v24, 16  ;;  %v1268_v35 = vrot.slane %v2179_v2, 1 }
  0x5d   : > { %v1038_v1 = vsel %vm883_vm8, %v1033_v58, %v1037_v59  ;;  %v1047_v36 = vshrl.u32 %v1654_v6, 16  ;;  %v1185_v45 = vshrl.u32 %v1659_v13, 16  ;;  %v1270_v51 = vrot.slane %v1571_v24, 1 }
  0x5e   : > { %v1184_v34 = vsel %vm883_vm8, %v1179_v27, %v1183_v28  ;;  %v918_v39 = vrot.slane %v916_v33, 1  ;;  %v1269_v41 = vsel %vm1262_vm12, %v1266_v5, %v1268_v35  ;;  %v920_v52 = vshrl.u32 %v1571_v24, 16 }
  0x5f   : > { %v1049_v42 = vor.u32 %v1047_v36, %v1045_v16  ;;  %v1187_v48 = vor.u32 %v1185_v45, %v1183_v28  ;;  %v1055_v53 = vshrl.u32 %v1596_v31, 16  ;;  %v1271_v54 = vsel %vm1262_vm12, %v1268_v35, %v1270_v51 }
  0x60   : > { %1531 = vmatmul.msk.bf16.gmra.mxu0 %vm719_vm2, %v1645_v23  ;;  %v1046_v23 = vsel %vm883_vm8, %v1041_v15, %v1045_v16  ;;  %v922_v55 = vor.u32 %v920_v52, %v918_v39 }
  0x65   : > { %1552 = vmatmul.msk.bf16.gmra.mxu1 %vm719_vm2, %v1641_v32  ;;  %v912_v32 = vshrl.u32 %v2179_v2, 16 }
  0x66   : > { %1572 = vmatmul.msk.bf16.vlgmr.msrb.gmra.mxu2 %vm719_vm2, %v895_v30  ;;  %v1051_v30 = vshll.u32 %v1596_v31, 16 }
  0x67   : > { %v914_v38 = vor.u32 %v912_v32, %v910_v12 }
  0x68   : > { %v1053_v43 = vrot.slane %v1051_v30, 1 }
  0x69   : > { %1597 = vmatmul.msk.bf16.vlgmr.msrb.gmra.mxu3 %vm1058_vm6, %v1030_v40  ;;  %v1622_v40 = vor.u32 %v1660_v37, %v1621_v29  ;;  %v919_v44 = vsel %vm883_vm8, %v914_v38, %v918_v39 }
  0x6a   : > { %v1054_v47 = vsel %vm883_vm8, %v1049_v42, %v1053_v43  ;;  %v1057_v56 = vor.u32 %v1055_v53, %v1053_v43 }
  0x6b   : > { %v1189_v46 = vshll.u32 %v1622_v40, 16 }
  0x70   : > { %1623 = vmatmul.msk.bf16.vlgmr.msrb.gmra.mxu0 %vm1058_vm6, %v1168_v49  ;;  %v1191_v49 = vrot.slane %v1189_v46, 1 }
  0x72   : > { %v1192_v50 = vsel %vm883_vm8, %v1187_v48, %v1191_v49 }
  0x75   : > { %1629 = vmatmul.msk.bf16.vlgmr.msrb.gmra.mxu1 %vm1058_vm6, %v1265_v57  ;;  %v1193_v57 = vshrl.u32 %v1622_v40, 16 }
  0x76   : > { %1573 = vmatmul.msk.bf16.gmra.mxu2 %vm719_vm2, %v903_v60 }
  0x77   : > { %v1195_v58 = vor.u32 %v1193_v57, %v1191_v49 }
  0x79   : > { %1598 = vmatmul.msk.bf16.gmra.mxu3 %vm1058_vm6, %v1038_v1 }
  0x80   : > { %1624 = vmatmul.msk.bf16.gmra.mxu0 %vm1058_vm6, %v1176_v9 }
  0x85   : > { %1630 = vmatmul.msk.bf16.gmra.mxu1 %vm1058_vm6, %v1267_v14 }
  0x86   : > { %1574 = vmatmul.msk.bf16.gmra.mxu2 %vm719_vm2, %v911_v17 }
  0x89   : > { %1599 = vmatmul.msk.bf16.gmra.mxu3 %vm1058_vm6, %v1046_v23 }
  0x90   : > { %1625 = vmatmul.msk.bf16.gmra.mxu0 %vm1058_vm6, %v1184_v34 }
  0x95   : > { %1631 = vmatmul.msk.bf16.gmra.mxu1 %vm1058_vm6, %v1269_v41 }
  0x96   : > { %1575 = vmatmul.msk.bf16.gmra.mxu2 %vm719_vm2, %v919_v44 }
  0x99   : > { %1600 = vmatmul.msk.bf16.gmra.mxu3 %vm1058_vm6, %v1054_v47 }
  0xa0   : > { %1626 = vmatmul.msk.bf16.gmra.mxu0 %vm1058_vm6, %v1192_v50 }
  0xa5   : > { %1632 = vmatmul.msk.bf16.gmra.mxu1 %vm1058_vm6, %v1271_v54 }
  0xa6   : > { %1576 = vmatmul.msk.bf16.gmra.mxu2 %vm719_vm2, %v922_v55 }
  0xa9   : > { %1601 = vmatmul.msk.bf16.gmra.mxu3 %vm1058_vm6, %v1057_v56 }
  0xaa   : > { %v748_v59 = vpop.f32.mrf.mxu0 }
  0xae   : > { %v822_v60 = vpop.f32.mrf.mxu1 }
  0xaf   : > { %v823_v16 = vadd.f32 %v822_v60, %v748_v59 }
  0xb0   : > { %1627 = vmatmul.msk.bf16.gmra.mxu0 %vm1058_vm6, %v1195_v58 }
  0xb2   : > { %v750_v61 = vpop.f32.mrf.mxu0 }
  0xb5   : > { %1633 = vmatmul.msk.bf16.gmra.mxu1 %vm1058_vm6, %v1270_v51 }
  0xb6   : > { %v824_v62 = vpop.f32.mrf.mxu1 }
  0xb7   : > { %v825_v25 = vadd.f32 %v824_v62, %v750_v61 }
  0xc9   : > { %v763_v63 = vpop.f32.mrf.mxu2 }
  0xcc   : > { %v837_v0 = vpop.f32.mrf.mxu3 }
  0xcd   : > { %v2211_v1 = vadd.f32 %v837_v0, %v763_v63  ;;  %v753_v2 = vpop.f32.mrf.mxu0 }
  0xd1   : > { %v765_v3 = vpop.f32.mrf.mxu2 }
  0xd2   : > { %v827_v4 = vpop.f32.mrf.mxu1 }
  0xd3   : > { %v828_v29 = vadd.f32 %v827_v4, %v753_v2 }
  0xd4   : > { %v839_v6 = vpop.f32.mrf.mxu3 }
  0xd5   : > { %v2213_v7 = vadd.f32 %v839_v6, %v765_v3  ;;  %v755_v8 = vpop.f32.mrf.mxu0 }
  0xd9   : > { %v768_v9 = vpop.f32.mrf.mxu2 }
  0xda   : > { %v829_v5 = vpop.f32.mrf.mxu1 }
  0xdb   : > { %v830_v46 = vadd.f32 %v829_v5, %v755_v8 }
  0xdc   : > { %v842_v18 = vpop.f32.mrf.mxu3 }
  0xdd   : > { %v2215_v10 = vadd.f32 %v842_v18, %v768_v9  ;;  %v758_v11 = vpop.f32.mrf.mxu0 }
  0xe1   : > { %v770_v12 = vpop.f32.mrf.mxu2 }
  0xe2   : > { %v832_v13 = vpop.f32.mrf.mxu1 }
  0xe3   : > { %v833_v56 = vadd.f32 %v832_v13, %v758_v11 }
  0xe4   : > { %v844_v14 = vpop.f32.mrf.mxu3 }
  0xe5   : > { %v760_v15 = vpop.f32.mrf.mxu0 }
  0xe9   : > { %v950_v17 = vpop.f32.mrf.mxu2 }
  0xea   : > { %v834_v19 = vpop.f32.mrf.mxu1  ;;  %v974_v20 = vadd.f32 %v950_v17, %v823_v16 }
  0xeb   : > { %v835_v3 = vadd.f32 %v834_v19, %v760_v15 }
  0xec   : > { %v1087_v21 = vpop.f32.mrf.mxu3 }
  0xed   : > { %v1111_v22 = vadd.f32 %v1087_v21, %v974_v20  ;;  %v1223_v23 = vpop.f32.mrf.mxu0 }
  0xef   : > { %v1247_v24 = vadd.f32 %v1223_v23, %v1111_v22 }
  0xf1   : > { %v952_v27 = vpop.f32.mrf.mxu2 }
  0xf2   : > { %v1299_v28 = vpop.f32.mrf.mxu1  ;;  %v975_v31 = vadd.f32 %v952_v27, %v825_v25 }
  0xf3   : > { %v1323_v32 = vadd.f32 %v1299_v28, %v1247_v24 }
  0xf4   : > { %v1089_v33 = vpop.f32.mrf.mxu3 }
  0xf5   : > { %v1336_v34 = vadd.f32 %v2223_v26, %v1323_v32  ;;  %v1112_v35 = vadd.f32 %v1089_v33, %v975_v31  ;;  %v1225_v36 = vpop.f32.mrf.mxu0 }
  0xf7   : > { %1345 = vst [vmem:[%s2226_s17] sm:$0xff] %v1336_v34  ;;  %v1248_v30 = vadd.f32 %v1225_v36, %v1112_v35 }
  0xf9   : > { %v955_v37 = vpop.f32.mrf.mxu2 }
  0xfa   : > { %v1301_v38 = vpop.f32.mrf.mxu1  ;;  %v976_v39 = vadd.f32 %v955_v37, %v828_v29 }
  0xfb   : > { %v1324_v40 = vadd.f32 %v1301_v38, %v1248_v30 }
  0xfc   : > { %v1092_v41 = vpop.f32.mrf.mxu3 }
  0xfd   : > { %v1337_v42 = vadd.f32 %v2223_v26, %v1324_v40  ;;  %v1113_v43 = vadd.f32 %v1092_v41, %v976_v39  ;;  %v1228_v44 = vpop.f32.mrf.mxu0 }
  0xff   : > { %1346 = vst [vmem:[%s2226_s17 + $0x8] sm:$0xff] %v1337_v42  ;;  %v1249_v45 = vadd.f32 %v1228_v44, %v1113_v43 }
 0x101   : > { %v957_v47 = vpop.f32.mrf.mxu2 }
 0x102   : > { %v1304_v48 = vpop.f32.mrf.mxu1  ;;  %v977_v49 = vadd.f32 %v957_v47, %v830_v46 }
 0x103   : > { %v1325_v50 = vadd.f32 %v1304_v48, %v1249_v45 }
 0x104   : > { %v1094_v51 = vpop.f32.mrf.mxu3 }
 0x105   : > { %v1338_v52 = vadd.f32 %v2223_v26, %v1325_v50  ;;  %v1114_v53 = vadd.f32 %v1094_v51, %v977_v49  ;;  %v1230_v54 = vpop.f32.mrf.mxu0 }
 0x107   : > { %1347 = vst [vmem:[%s2226_s17 + $0x10] sm:$0xff] %v1338_v52  ;;  %v1250_v55 = vadd.f32 %v1230_v54, %v1114_v53 }
 0x109   : > { %v960_v57 = vpop.f32.mrf.mxu2 }
 0x10a   : > { %v1306_v58 = vpop.f32.mrf.mxu1  ;;  %v978_v59 = vadd.f32 %v960_v57, %v833_v56 }
 0x10b   : > { %v1326_v60 = vadd.f32 %v1306_v58, %v1250_v55 }
 0x10c   : > { %v1097_v61 = vpop.f32.mrf.mxu3 }
 0x10d   : > { %v1339_v62 = vadd.f32 %v2223_v26, %v1326_v60  ;;  %v1115_v63 = vadd.f32 %v1097_v61, %v978_v59  ;;  %v1233_v0 = vpop.f32.mrf.mxu0 }
 0x10f   : > { %1348 = vst [vmem:[%s2226_s17 + $0x18] sm:$0xff] %v1339_v62  ;;  %v1251_v2 = vadd.f32 %v1233_v0, %v1115_v63 }
 0x111   : > { %v962_v4 = vpop.f32.mrf.mxu2 }
 0x112   : > { %v1309_v6 = vpop.f32.mrf.mxu1  ;;  %v979_v8 = vadd.f32 %v962_v4, %v835_v3 }
 0x113   : > { %v1327_v9 = vadd.f32 %v1309_v6, %v1251_v2 }
 0x114   : > { %v1099_v5 = vpop.f32.mrf.mxu3 }
 0x115   : > { %v1340_v18 = vadd.f32 %v2223_v26, %v1327_v9  ;;  %v1116_v11 = vadd.f32 %v1099_v5, %v979_v8  ;;  %v1235_v12 = vpop.f32.mrf.mxu0 }
 0x117   : > { %1349 = vst [vmem:[%s2226_s17 + $0x20] sm:$0xff] %v1340_v18  ;;  %v1252_v13 = vadd.f32 %v1235_v12, %v1116_v11 }
 0x119   : > { %v965_v14 = vpop.f32.mrf.mxu2 }
 0x11a   : > { %v1311_v16 = vpop.f32.mrf.mxu1  ;;  %v980_v17 = vadd.f32 %v965_v14, %v2211_v1 }
 0x11b   : > { %v1328_v20 = vadd.f32 %v1311_v16, %v1252_v13 }
 0x11c   : > { %v1102_v21 = vpop.f32.mrf.mxu3 }
 0x11d   : > { %v1341_v15 = vadd.f32 %v2223_v26, %v1328_v20  ;;  %v1117_v19 = vadd.f32 %v1102_v21, %v980_v17  ;;  %v1238_v22 = vpop.f32.mrf.mxu0 }
 0x11f   : > { %1350 = vst [vmem:[%s2226_s17 + $0x28] sm:$0xff] %v1341_v15  ;;  %v1253_v23 = vadd.f32 %v1238_v22, %v1117_v19 }
 0x121   : > { %v967_v24 = vpop.f32.mrf.mxu2 }
 0x122   : > { %v1314_v25 = vpop.f32.mrf.mxu1  ;;  %v981_v27 = vadd.f32 %v967_v24, %v2213_v7 }
 0x123   : > { %v1329_v28 = vadd.f32 %v1314_v25, %v1253_v23 }
 0x124   : > { %v1104_v31 = vpop.f32.mrf.mxu3 }
 0x125   : > { %v1342_v32 = vadd.f32 %v2223_v26, %v1329_v28  ;;  %v1118_v1 = vadd.f32 %v1104_v31, %v981_v27  ;;  %v1240_v33 = vpop.f32.mrf.mxu0 }
 0x127   : > { %1351 = vst [vmem:[%s2226_s17 + $0x30] sm:$0xff] %v1342_v32  ;;  %v1254_v34 = vadd.f32 %v1240_v33, %v1118_v1 }
 0x129   : > { %v970_v35 = vpop.f32.mrf.mxu2 }
 0x12a   : > { %v1316_v36 = vpop.f32.mrf.mxu1  ;;  %v982_v30 = vadd.f32 %v970_v35, %v2215_v10 }
 0x12b   : > { %v1330_v29 = vadd.f32 %v1316_v36, %v1254_v34 }
 0x12c   : > { %v1107_v37 = vpop.f32.mrf.mxu3 }
 0x12d   : > { %v1343_v38 = vadd.f32 %v2223_v26, %v1330_v29  ;;  %v1119_v7 = vadd.f32 %v1107_v37, %v982_v30  ;;  %v1243_v39 = vpop.f32.mrf.mxu0 }
 0x12f   : > { %1352 = vst [vmem:[%s2226_s17 + $0x38] sm:$0xff] %v1343_v38  ;;  %v1255_v40 = vadd.f32 %v1243_v39, %v1119_v7 }
 0x131   : > { %v972_v41 = vpop.f32.mrf.mxu2 }
 0x132   : > { %v1319_v10 = vpop.f32.mrf.mxu1 }
 0x133   : > { %v1331_v42 = vadd.f32 %v1319_v10, %v1255_v40 }
 0x134   : > { %v1109_v43 = vpop.f32.mrf.mxu3 }
 0x135   : > { %v1344_v44 = vadd.f32 %v2223_v26, %v1331_v42  ;;  %v1245_v45 = vpop.f32.mrf.mxu0 }
 0x137   : > { %1353 = vst [vmem:[%s2226_s17 + $0x40] sm:$0xff] %v1344_v44 }
 0x138   : > { %1756 = shalt.err (!%p1753_p5)
}
 0x139   : > { %s1809_s13 = smov 128   ;;  %s1810_s17 = smov 8  }
 0x13a   : > { %1667 = dma.vmem_to_hbm [thread:$0]  (%p1881_p4), %s1370_s7, 1152, %s1372_s8, %s1355_s21, %s1809_s13, %s1809_s13, %s1810_s17   ;;  %v1321_v26 = vpop.f32.mrf.mxu1 }
 0x13b PF: > { %p1674_p6 = scmp.ge.s32.totalorder %s1807_s23, 2  ;;  %s1386_s24 = sand.u32 1, %s1787_s18  }
 0x13c   : > { %s1387_s25 = scalar_lea.sflag [#allocation4], %s1386_s24 }
 0x13d   : > { %p1670_p7 = pnand %p1674_p6, %p1888_p8 }
 0x13f   : > { %p1671_p9 = pneg %p1670_p7 }
 0x141   : > { %1782 = dma.done.wait (%p1671_p9), %s1387_s25, 1152  }
 0x142   : > { %1784 = vsyncadd (%p1671_p9), %s1387_s25, 4294966144  ;;  %s18_s23 = sadd.s32 1, %s1807_s23   ;;  %s2337_s18 = smov %s1791_s19 }
 0x143   : > { %p15_p10 = scmp.ge.s32.totalorder %s18_s23, 4   ;;  %s2338_s19 = smov %s1795_s20 }
 0x144   : > { %s2339_s20 = smov %s1894_s6  ;;  %s2340_s21 = smov %s1803_s22 }
 0x145   : > { %s2341_s22 = smov %s2343_s26  ;;  %17 = sbr.rel (!%p15_p10) target bundleno = 4 (0x4), region = 98 }
 0x14a   :  { %1393 = vsyncpa [#allocation4], 1 }
 0x14b   :  { %1395 = vsyncpa [#allocation4 + $0x1], 1 }

</bundles_post_ra>
